<compile_context>
chip_gen: v7x
topology: tpu7x:2x2x1
jax: 0.10.0
libtpu: 0.0.40
codegen_flags: <defaults>
</compile_context>

<pallas_src>
import jax
import jax.numpy as jnp
from jax.experimental import pallas as pl
from jax.experimental.pallas import tpu as pltpu

# hp.* from the original repo (kept small for this synthetic test)
NUM_MELS = 8
OUTPUTS_PER_STEP = 2
LANE = 128


# ------------------------------- kernel ------------------------------------ #
def _gru_fused(x, h, wx_ref, wh_ref, b_ref):
    """PyTorch nn.GRUCell with gate-stacked (·, 4H) weights, split x/h blocks.

    wx_ref : (in, 4H) columns = [r_x | z_x | n_x | 0   ]
    wh_ref : (H,  4H) columns = [r_h | z_h | 0   | n_h ]
    b_ref  : (1,  4H) = [b_ir+b_hr | b_iz+b_hz | b_in | b_hn]
    No lane concat: two matmuls share the same 4H=128-lane MXU footprint.
    """
    H = h.shape[-1]
    g = (jnp.dot(x, wx_ref[...], preferred_element_type=jnp.float32)
         + jnp.dot(h, wh_ref[...], preferred_element_type=jnp.float32)
         + b_ref[...])
    r = jax.nn.sigmoid(g[:, :H])
    z = jax.nn.sigmoid(g[:, H:2 * H])
    n = jnp.tanh(g[:, 2 * H:3 * H] + r * g[:, 3 * H:])
    return (1.0 - z) * n + z * h


def decoder_step_kernel(
    # activations
    dec_in_ref, memory_ref, attn_h_ref, gru1_h_ref, gru2_h_ref,
    # parameters
    w1_ref, v_ref, w2pa_ref,
    ag_wx_ref, ag_wh_ref, ag_b_ref,
    g1_wx_ref, g1_wh_ref, g1_b_ref,
    g2_wx_ref, g2_wh_ref, g2_b_ref,
    proj_wb_ref, proj_b_ref, out_w_ref, out_b_ref,
    # packed output
    slab_ref,
):
    memory = memory_ref[...]                                   # (B, T, H)
    B, T, H = memory.shape

    # keys = W1(memory) — fused into the step (memory is step-invariant).
    keys = jnp.dot(memory.reshape(B * T, H), w1_ref[...],
                   preferred_element_type=jnp.float32).reshape(B, T, H)

    # d_t = attn_grucell(decoder_input, attn_hidden)
    d_t = _gru_fused(dec_in_ref[...], attn_h_ref[...],
                     ag_wx_ref, ag_wh_ref, ag_b_ref)

    # shared-LHS fusion: d_t @ [W2 | proj_wa] in one MXU pass.
    td = jnp.dot(d_t, w2pa_ref[...], preferred_element_type=jnp.float32)  # (B,2H)
    d_t_dup = td[:, :H]
    proj_a = td[:, H:]

    # attention scores: v . tanh(keys + W2 d_t) — VPU multiply + lane reduce
    # (no M=1 batched matmul), softmax over T with EUP exp + approx reciprocal.
    e = jnp.tanh(keys + d_t_dup[:, None, :])                   # (B, T, H)
    scores = jnp.sum(e * v_ref[...], axis=-1, keepdims=True)   # (B, T, 1)
    scores = scores - jnp.max(scores, axis=1, keepdims=True)
    p = jnp.exp(scores)
    attn = p * pl.reciprocal(jnp.sum(p, axis=1, keepdims=True), approx=True)

    # context vector: broadcast over H + reduce over T (VPU + XLU, no matmul)
    d_t_prime = jnp.sum(attn * memory, axis=1)                  # (B, H)

    # gru1_input = attn_projection(cat(d_t, d_t_prime)); weight pre-split so
    # there is no lane concat; the d_t half came out of the fused matmul above.
    gru1_input = (proj_a
                  + jnp.dot(d_t_prime, proj_wb_ref[...],
                            preferred_element_type=jnp.float32)
                  + proj_b_ref[...])

    gru1_hidden = _gru_fused(gru1_input, gru1_h_ref[...],
                             g1_wx_ref, g1_wh_ref, g1_b_ref)
    gru2_input = gru1_input + gru1_hidden
    gru2_hidden = _gru_fused(gru2_input, gru2_h_ref[...],
                             g2_wx_ref, g2_wh_ref, g2_b_ref)
    bf_out = gru2_input + gru2_hidden

    output = jnp.dot(bf_out, out_w_ref[...],
                     preferred_element_type=jnp.float32) + out_b_ref[...]

    # one lane-dense slab write: [output_padded | d_t | gru1_hidden | gru2_hidden]
    slab_ref[...] = jnp.concatenate([output, d_t, gru1_hidden, gru2_hidden],
                                    axis=-1)


# ------------------------- wrapper / param repacking ------------------------ #
def _split_gru(wih, whh, bih, bhh):
    """Gate-stacked GRU weights, split into x/h blocks (no in-kernel concat)."""
    H = whh.shape[0]
    in_dim = wih.shape[0]
    zx = jnp.zeros((in_dim, H), jnp.float32)
    zh = jnp.zeros((H, H), jnp.float32)
    wx = jnp.concatenate([wih[:, :H], wih[:, H:2 * H], wih[:, 2 * H:], zx], axis=1)
    wh = jnp.concatenate([whh[:, :H], whh[:, H:2 * H], zh, whh[:, 2 * H:]], axis=1)
    b = jnp.concatenate([
        bih[:, :H] + bhh[:, :H],
        bih[:, H:2 * H] + bhh[:, H:2 * H],
        bih[:, 2 * H:],
        bhh[:, 2 * H:],
    ], axis=1)
    return wx, wh, b


def attention_decoder(decoder_input, memory, attn_hidden, gru1_hidden,
                      gru2_hidden, params):
    B, T, H = memory.shape
    out_dim = NUM_MELS * OUTPUTS_PER_STEP

    # parameter repacking (cheap XLA ops; hoisted out of the decode loop in a
    # real decoder since weights are step-invariant)
    ag_wx, ag_wh, ag_b = _split_gru(params["ag_wih"], params["ag_whh"],
                                    params["ag_bih"], params["ag_bhh"])
    g1_wx, g1_wh, g1_b = _split_gru(params["g1_wih"], params["g1_whh"],
                                    params["g1_bih"], params["g1_bhh"])
    g2_wx, g2_wh, g2_b = _split_gru(params["g2_wih"], params["g2_whh"],
                                    params["g2_bih"], params["g2_bhh"])
    # fused shared-LHS RHS: [W2 | proj_wa] (both multiply d_t)
    w2pa = jnp.concatenate([params["w2"], params["proj_w"][:H]], axis=1)
    proj_wb = params["proj_w"][H:]          # d_t_prime half

    # pad the output projection so the packed slab is a multiple of 128 lanes
    slab_raw = out_dim + 3 * H
    pad = (-slab_raw) % LANE
    out_pad_dim = out_dim + pad
    out_w_p = jnp.pad(params["out_w"], ((0, 0), (0, pad)))
    out_b_p = jnp.pad(params["out_b"], ((0, 0), (0, pad)))
    slab_w = out_pad_dim + 3 * H

    vmem = pl.BlockSpec(memory_space=pltpu.MemorySpace.VMEM)
    args = [
        decoder_input, memory, attn_hidden, gru1_hidden, gru2_hidden,
        params["w1"], params["v"], w2pa,
        ag_wx, ag_wh, ag_b, g1_wx, g1_wh, g1_b, g2_wx, g2_wh, g2_b,
        proj_wb, params["proj_b"], out_w_p, out_b_p,
    ]

    slab = pl.pallas_call(
        decoder_step_kernel,
        out_shape=jax.ShapeDtypeStruct((B, slab_w), jnp.float32),
        in_specs=[vmem] * len(args),
        out_specs=vmem,
    )(*args)

    output = slab[:, :out_dim]
    d_t = slab[:, out_pad_dim:out_pad_dim + H]
    g1h = slab[:, out_pad_dim + H:out_pad_dim + 2 * H]
    g2h = slab[:, out_pad_dim + 2 * H:out_pad_dim + 3 * H]
    # matches torch: .view(-1, num_mels, outputs_per_step)
    return output.reshape(-1, NUM_MELS, OUTPUTS_PER_STEP), d_t, g1h, g2h


# ----------------------- deterministic param init -------------------------- #
def init_params(key, num_units):
    H = num_units
    out_dim = NUM_MELS * OUTPUTS_PER_STEP

    def uni(key, shape, fan_in):
        bound = 1.0 / jnp.sqrt(jnp.float32(fan_in))
        return jax.random.uniform(key, shape, jnp.float32, -bound, bound)

    keys = jax.random.split(key, 24)
    k = iter(keys)
    p = {}
    # Linear weights stored as (in, out) = torch_weight.T
    p["w1"] = uni(next(k), (H, H), H)
    p["w2"] = uni(next(k), (H, H), H)
    p["v"] = uni(next(k), (1, H), H)             # v: Linear(H, 1) -> row vector
    # GRU cells: (in, 3H), (H, 3H), biases (1, 3H); torch bound = 1/sqrt(H)
    p["ag_wih"] = uni(next(k), (H // 2, 3 * H), H)
    p["ag_whh"] = uni(next(k), (H, 3 * H), H)
    p["ag_bih"] = uni(next(k), (1, 3 * H), H)
    p["ag_bhh"] = uni(next(k), (1, 3 * H), H)
    p["g1_wih"] = uni(next(k), (H, 3 * H), H)
    p["g1_whh"] = uni(next(k), (H, 3 * H), H)
    p["g1_bih"] = uni(next(k), (1, 3 * H), H)
    p["g1_bhh"] = uni(next(k), (1, 3 * H), H)
    p["g2_wih"] = uni(next(k), (H, 3 * H), H)
    p["g2_whh"] = uni(next(k), (H, 3 * H), H)
    p["g2_bih"] = uni(next(k), (1, 3 * H), H)
    p["g2_bhh"] = uni(next(k), (1, 3 * H), H)
    # attn_projection: Linear(2H, H) with bias
    p["proj_w"] = uni(next(k), (2 * H, H), 2 * H)
    p["proj_b"] = uni(next(k), (1, H), 2 * H)
    # out: Linear(H, num_mels * outputs_per_step) with bias
    p["out_w"] = uni(next(k), (H, out_dim), H)
    p["out_b"] = uni(next(k), (1, out_dim), H)
    return p


# --------------------------- pure-JAX reference ----------------------------- #
def reference(decoder_input, memory, attn_hidden, gru1_hidden, gru2_hidden, p):
    def gru(x, h, wih, whh, bih, bhh):
        H = h.shape[-1]
        gi = x @ wih + bih
        gh = h @ whh + bhh
        r = jax.nn.sigmoid(gi[:, :H] + gh[:, :H])
        z = jax.nn.sigmoid(gi[:, H:2 * H] + gh[:, H:2 * H])
        n = jnp.tanh(gi[:, 2 * H:] + r * gh[:, 2 * H:])
        return (1 - z) * n + z * h

    B, T, H = memory.shape
    keys = (memory.reshape(-1, H) @ p["w1"]).reshape(B, T, H)
    d_t = gru(decoder_input, attn_hidden, p["ag_wih"], p["ag_whh"],
              p["ag_bih"], p["ag_bhh"])
    e = jnp.tanh(keys + (d_t @ p["w2"])[:, None, :])
    scores = jnp.sum(e * p["v"][None, :, :], axis=-1)
    attn = jax.nn.softmax(scores, axis=-1)
    d_t_prime = jnp.einsum("bt,bth->bh", attn, memory)
    gru1_input = jnp.concatenate([d_t, d_t_prime], -1) @ p["proj_w"] + p["proj_b"]
    g1h = gru(gru1_input, gru1_hidden, p["g1_wih"], p["g1_whh"],
              p["g1_bih"], p["g1_bhh"])
    gru2_input = gru1_input + g1h
    g2h = gru(gru2_input, gru2_hidden, p["g2_wih"], p["g2_whh"],
              p["g2_bih"], p["g2_bhh"])
    bf = gru2_input + g2h
    out = (bf @ p["out_w"] + p["out_b"]).reshape(-1, NUM_MELS, OUTPUTS_PER_STEP)
    return out, d_t, g1h, g2h


# --------------------------------- main ------------------------------------- #
if __name__ == "__main__":
    B, T, H = 8, 8, 32  # batch (fills all 8 sublanes), memory length, num_units

    root = jax.random.PRNGKey(0)
    kp, k1, k2 = jax.random.split(root, 3)
    params = init_params(kp, H)

    decoder_input = jax.random.normal(k1, (B, H // 2), jnp.float32)
    memory = jax.random.normal(k2, (B, T, H), jnp.float32)
    attn_hidden = jnp.zeros((B, H), jnp.float32)   # inithidden()
    gru1_hidden = jnp.zeros((B, H), jnp.float32)
    gru2_hidden = jnp.zeros((B, H), jnp.float32)

    outs = attention_decoder(decoder_input, memory, attn_hidden,
                             gru1_hidden, gru2_hidden, params)
    outs = jax.block_until_ready(outs)

    refs = reference(decoder_input, memory, attn_hidden,
                     gru1_hidden, gru2_hidden, params)
    # Tolerance slightly relaxed vs f32-exact: the only intentional deviation
    # is the EUP approximate reciprocal used for the softmax denominator.
    for a, b in zip(outs, refs):
        assert a.shape == b.shape
        assert jnp.allclose(a, b, rtol=2e-3, atol=2e-3), "mismatch vs reference"

    print("KERNEL_OK")
</pallas_src>

<mosaic_0001>
module attributes {stable_mosaic.version = 11 : i64} {
  func.func @decoder_step_kernel(%arg0: memref<8x16xf32, #tpu.memory_space<vmem>>, %arg1: memref<8x8x32xf32, #tpu.memory_space<vmem>>, %arg2: memref<8x32xf32, #tpu.memory_space<vmem>>, %arg3: memref<8x32xf32, #tpu.memory_space<vmem>>, %arg4: memref<8x32xf32, #tpu.memory_space<vmem>>, %arg5: memref<32x32xf32, #tpu.memory_space<vmem>>, %arg6: memref<1x32xf32, #tpu.memory_space<vmem>>, %arg7: memref<32x64xf32, #tpu.memory_space<vmem>>, %arg8: memref<16x128xf32, #tpu.memory_space<vmem>>, %arg9: memref<32x128xf32, #tpu.memory_space<vmem>>, %arg10: memref<1x128xf32, #tpu.memory_space<vmem>>, %arg11: memref<32x128xf32, #tpu.memory_space<vmem>>, %arg12: memref<32x128xf32, #tpu.memory_space<vmem>>, %arg13: memref<1x128xf32, #tpu.memory_space<vmem>>, %arg14: memref<32x128xf32, #tpu.memory_space<vmem>>, %arg15: memref<32x128xf32, #tpu.memory_space<vmem>>, %arg16: memref<1x128xf32, #tpu.memory_space<vmem>>, %arg17: memref<32x32xf32, #tpu.memory_space<vmem>>, %arg18: memref<1x32xf32, #tpu.memory_space<vmem>>, %arg19: memref<32x32xf32, #tpu.memory_space<vmem>>, %arg20: memref<1x32xf32, #tpu.memory_space<vmem>>, %arg21: memref<8x128xf32, #tpu.memory_space<vmem>>) attributes {dimension_semantics = [], scalar_prefetch = 0 : i64, scratch_operands = 0 : i64, tpu.core_type = #tpu.core_type<tc>} {
    %c0 = arith.constant 0 : index
    %c0_0 = arith.constant 0 : index
    %c0_1 = arith.constant 0 : index
    %0 = vector.load %arg1[%c0, %c0_0, %c0_1] : memref<8x8x32xf32, #tpu.memory_space<vmem>>, vector<8x8x32xf32>
    %1 = vector.shape_cast %0 : vector<8x8x32xf32> to vector<64x32xf32>
    %c0_2 = arith.constant 0 : index
    %c0_3 = arith.constant 0 : index
    %2 = vector.load %arg5[%c0_2, %c0_3] : memref<32x32xf32, #tpu.memory_space<vmem>>, vector<32x32xf32>
    %cst = arith.constant dense<0.000000e+00> : vector<64x32xf32>
    %3 = tpu.matmul %1, %2, %cst {dimension_numbers = #tpu.dot_dimension_numbers<[1], [0], [0], [1], [0, 0, 1, 1], [], []>} : vector<64x32xf32>, vector<32x32xf32>, vector<64x32xf32> -> vector<64x32xf32>
    %4 = vector.shape_cast %3 : vector<64x32xf32> to vector<8x8x32xf32>
    %c0_4 = arith.constant 0 : index
    %c0_5 = arith.constant 0 : index
    %5 = vector.load %arg0[%c0_4, %c0_5] : memref<8x16xf32, #tpu.memory_space<vmem>>, vector<8x16xf32>
    %c0_6 = arith.constant 0 : index
    %c0_7 = arith.constant 0 : index
    %6 = vector.load %arg2[%c0_6, %c0_7] : memref<8x32xf32, #tpu.memory_space<vmem>>, vector<8x32xf32>
    %c0_8 = arith.constant 0 : index
    %c0_9 = arith.constant 0 : index
    %7 = vector.load %arg8[%c0_8, %c0_9] : memref<16x128xf32, #tpu.memory_space<vmem>>, vector<16x128xf32>
    %cst_10 = arith.constant dense<0.000000e+00> : vector<8x128xf32>
    %8 = tpu.matmul %5, %7, %cst_10 {dimension_numbers = #tpu.dot_dimension_numbers<[1], [0], [0], [1], [0, 0, 1, 1], [], []>} : vector<8x16xf32>, vector<16x128xf32>, vector<8x128xf32> -> vector<8x128xf32>
    %c0_11 = arith.constant 0 : index
    %c0_12 = arith.constant 0 : index
    %9 = vector.load %arg9[%c0_11, %c0_12] : memref<32x128xf32, #tpu.memory_space<vmem>>, vector<32x128xf32>
    %cst_13 = arith.constant dense<0.000000e+00> : vector<8x128xf32>
    %10 = tpu.matmul %6, %9, %cst_13 {dimension_numbers = #tpu.dot_dimension_numbers<[1], [0], [0], [1], [0, 0, 1, 1], [], []>} : vector<8x32xf32>, vector<32x128xf32>, vector<8x128xf32> -> vector<8x128xf32>
    %11 = arith.addf %8, %10 : vector<8x128xf32>
    %c0_14 = arith.constant 0 : index
    %c0_15 = arith.constant 0 : index
    %12 = vector.load %arg10[%c0_14, %c0_15] : memref<1x128xf32, #tpu.memory_space<vmem>>, vector<1x128xf32>
    %13 = vector.broadcast %12 : vector<1x128xf32> to vector<8x128xf32>
    %14 = arith.addf %11, %13 : vector<8x128xf32>
    %15 = vector.extract_strided_slice %14 {offsets = [0, 0], sizes = [8, 32], strides = [1, 1]} : vector<8x128xf32> to vector<8x32xf32>
    %16 = arith.negf %15 : vector<8x32xf32>
    %17 = math.exp %16 : vector<8x32xf32>
    %cst_16 = arith.constant 1.000000e+00 : f32
    %18 = vector.broadcast %cst_16 : f32 to vector<8x32xf32>
    %19 = arith.addf %18, %17 : vector<8x32xf32>
    %20 = arith.divf %18, %19 : vector<8x32xf32>
    %21 = vector.extract_strided_slice %14 {offsets = [0, 32], sizes = [8, 32], strides = [1, 1]} : vector<8x128xf32> to vector<8x32xf32>
    %22 = arith.negf %21 : vector<8x32xf32>
    %23 = math.exp %22 : vector<8x32xf32>
    %cst_17 = arith.constant 1.000000e+00 : f32
    %24 = vector.broadcast %cst_17 : f32 to vector<8x32xf32>
    %25 = arith.addf %24, %23 : vector<8x32xf32>
    %26 = arith.divf %24, %25 : vector<8x32xf32>
    %27 = vector.extract_strided_slice %14 {offsets = [0, 64], sizes = [8, 32], strides = [1, 1]} : vector<8x128xf32> to vector<8x32xf32>
    %28 = vector.extract_strided_slice %14 {offsets = [0, 96], sizes = [8, 32], strides = [1, 1]} : vector<8x128xf32> to vector<8x32xf32>
    %29 = arith.mulf %20, %28 : vector<8x32xf32>
    %30 = arith.addf %27, %29 : vector<8x32xf32>
    %31 = math.tanh %30 : vector<8x32xf32>
    %cst_18 = arith.constant 1.000000e+00 : f32
    %32 = vector.broadcast %cst_18 : f32 to vector<8x32xf32>
    %33 = arith.subf %32, %26 : vector<8x32xf32>
    %34 = arith.mulf %33, %31 : vector<8x32xf32>
    %35 = arith.mulf %26, %6 : vector<8x32xf32>
    %36 = arith.addf %34, %35 : vector<8x32xf32>
    %c0_19 = arith.constant 0 : index
    %c0_20 = arith.constant 0 : index
    %37 = vector.load %arg7[%c0_19, %c0_20] : memref<32x64xf32, #tpu.memory_space<vmem>>, vector<32x64xf32>
    %cst_21 = arith.constant dense<0.000000e+00> : vector<8x64xf32>
    %38 = tpu.matmul %36, %37, %cst_21 {dimension_numbers = #tpu.dot_dimension_numbers<[1], [0], [0], [1], [0, 0, 1, 1], [], []>} : vector<8x32xf32>, vector<32x64xf32>, vector<8x64xf32> -> vector<8x64xf32>
    %39 = vector.extract_strided_slice %38 {offsets = [0, 0], sizes = [8, 32], strides = [1, 1]} : vector<8x64xf32> to vector<8x32xf32>
    %40 = vector.extract_strided_slice %38 {offsets = [0, 32], sizes = [8, 32], strides = [1, 1]} : vector<8x64xf32> to vector<8x32xf32>
    %41 = vector.shape_cast %39 : vector<8x32xf32> to vector<8x1x32xf32>
    %42 = vector.broadcast %41 : vector<8x1x32xf32> to vector<8x8x32xf32>
    %43 = arith.addf %4, %42 : vector<8x8x32xf32>
    %44 = math.tanh %43 : vector<8x8x32xf32>
    %c0_22 = arith.constant 0 : index
    %c0_23 = arith.constant 0 : index
    %45 = vector.load %arg6[%c0_22, %c0_23] : memref<1x32xf32, #tpu.memory_space<vmem>>, vector<1x32xf32>
    %46 = vector.shape_cast %45 : vector<1x32xf32> to vector<1x1x32xf32>
    %47 = vector.broadcast %46 : vector<1x1x32xf32> to vector<8x8x32xf32>
    %48 = arith.mulf %44, %47 : vector<8x8x32xf32>
    %cst_24 = arith.constant dense<0.000000e+00> : vector<8x8xf32>
    %49 = vector.multi_reduction <add>, %48, %cst_24 [2] : vector<8x8x32xf32> to vector<8x8xf32>
    %50 = vector.shape_cast %49 : vector<8x8xf32> to vector<8x8x1xf32>
    %cst_25 = arith.constant dense<0xFF800000> : vector<8x1xf32>
    %51 = vector.multi_reduction <maximumf>, %50, %cst_25 [1] : vector<8x8x1xf32> to vector<8x1xf32>
    %52 = vector.shape_cast %51 : vector<8x1xf32> to vector<8x1x1xf32>
    %53 = vector.broadcast %52 : vector<8x1x1xf32> to vector<8x8x1xf32>
    %54 = arith.subf %50, %53 : vector<8x8x1xf32>
    %55 = math.exp %54 : vector<8x8x1xf32>
    %cst_26 = arith.constant dense<0.000000e+00> : vector<8x1xf32>
    %56 = vector.multi_reduction <add>, %55, %cst_26 [1] : vector<8x8x1xf32> to vector<8x1xf32>
    %57 = vector.shape_cast %56 : vector<8x1xf32> to vector<8x1x1xf32>
    %58 = tpu.reciprocal %57 {approx = true} : vector<8x1x1xf32> -> vector<8x1x1xf32>
    %59 = vector.broadcast %58 : vector<8x1x1xf32> to vector<8x8x1xf32>
    %60 = arith.mulf %55, %59 : vector<8x8x1xf32>
    %61 = vector.broadcast %60 : vector<8x8x1xf32> to vector<8x8x32xf32>
    %62 = arith.mulf %61, %0 : vector<8x8x32xf32>
    %cst_27 = arith.constant dense<0.000000e+00> : vector<8x32xf32>
    %63 = vector.multi_reduction <add>, %62, %cst_27 [1] : vector<8x8x32xf32> to vector<8x32xf32>
    %c0_28 = arith.constant 0 : index
    %c0_29 = arith.constant 0 : index
    %64 = vector.load %arg17[%c0_28, %c0_29] : memref<32x32xf32, #tpu.memory_space<vmem>>, vector<32x32xf32>
    %cst_30 = arith.constant dense<0.000000e+00> : vector<8x32xf32>
    %65 = tpu.matmul %63, %64, %cst_30 {dimension_numbers = #tpu.dot_dimension_numbers<[1], [0], [0], [1], [0, 0, 1, 1], [], []>} : vector<8x32xf32>, vector<32x32xf32>, vector<8x32xf32> -> vector<8x32xf32>
    %66 = arith.addf %40, %65 : vector<8x32xf32>
    %c0_31 = arith.constant 0 : index
    %c0_32 = arith.constant 0 : index
    %67 = vector.load %arg18[%c0_31, %c0_32] : memref<1x32xf32, #tpu.memory_space<vmem>>, vector<1x32xf32>
    %68 = vector.broadcast %67 : vector<1x32xf32> to vector<8x32xf32>
    %69 = arith.addf %66, %68 : vector<8x32xf32>
    %c0_33 = arith.constant 0 : index
    %c0_34 = arith.constant 0 : index
    %70 = vector.load %arg3[%c0_33, %c0_34] : memref<8x32xf32, #tpu.memory_space<vmem>>, vector<8x32xf32>
    %c0_35 = arith.constant 0 : index
    %c0_36 = arith.constant 0 : index
    %71 = vector.load %arg11[%c0_35, %c0_36] : memref<32x128xf32, #tpu.memory_space<vmem>>, vector<32x128xf32>
    %cst_37 = arith.constant dense<0.000000e+00> : vector<8x128xf32>
    %72 = tpu.matmul %69, %71, %cst_37 {dimension_numbers = #tpu.dot_dimension_numbers<[1], [0], [0], [1], [0, 0, 1, 1], [], []>} : vector<8x32xf32>, vector<32x128xf32>, vector<8x128xf32> -> vector<8x128xf32>
    %c0_38 = arith.constant 0 : index
    %c0_39 = arith.constant 0 : index
    %73 = vector.load %arg12[%c0_38, %c0_39] : memref<32x128xf32, #tpu.memory_space<vmem>>, vector<32x128xf32>
    %cst_40 = arith.constant dense<0.000000e+00> : vector<8x128xf32>
    %74 = tpu.matmul %70, %73, %cst_40 {dimension_numbers = #tpu.dot_dimension_numbers<[1], [0], [0], [1], [0, 0, 1, 1], [], []>} : vector<8x32xf32>, vector<32x128xf32>, vector<8x128xf32> -> vector<8x128xf32>
    %75 = arith.addf %72, %74 : vector<8x128xf32>
    %c0_41 = arith.constant 0 : index
    %c0_42 = arith.constant 0 : index
    %76 = vector.load %arg13[%c0_41, %c0_42] : memref<1x128xf32, #tpu.memory_space<vmem>>, vector<1x128xf32>
    %77 = vector.broadcast %76 : vector<1x128xf32> to vector<8x128xf32>
    %78 = arith.addf %75, %77 : vector<8x128xf32>
    %79 = vector.extract_strided_slice %78 {offsets = [0, 0], sizes = [8, 32], strides = [1, 1]} : vector<8x128xf32> to vector<8x32xf32>
    %80 = arith.negf %79 : vector<8x32xf32>
    %81 = math.exp %80 : vector<8x32xf32>
    %cst_43 = arith.constant 1.000000e+00 : f32
    %82 = vector.broadcast %cst_43 : f32 to vector<8x32xf32>
    %83 = arith.addf %82, %81 : vector<8x32xf32>
    %84 = arith.divf %82, %83 : vector<8x32xf32>
    %85 = vector.extract_strided_slice %78 {offsets = [0, 32], sizes = [8, 32], strides = [1, 1]} : vector<8x128xf32> to vector<8x32xf32>
    %86 = arith.negf %85 : vector<8x32xf32>
    %87 = math.exp %86 : vector<8x32xf32>
    %cst_44 = arith.constant 1.000000e+00 : f32
    %88 = vector.broadcast %cst_44 : f32 to vector<8x32xf32>
    %89 = arith.addf %88, %87 : vector<8x32xf32>
    %90 = arith.divf %88, %89 : vector<8x32xf32>
    %91 = vector.extract_strided_slice %78 {offsets = [0, 64], sizes = [8, 32], strides = [1, 1]} : vector<8x128xf32> to vector<8x32xf32>
    %92 = vector.extract_strided_slice %78 {offsets = [0, 96], sizes = [8, 32], strides = [1, 1]} : vector<8x128xf32> to vector<8x32xf32>
    %93 = arith.mulf %84, %92 : vector<8x32xf32>
    %94 = arith.addf %91, %93 : vector<8x32xf32>
    %95 = math.tanh %94 : vector<8x32xf32>
    %cst_45 = arith.constant 1.000000e+00 : f32
    %96 = vector.broadcast %cst_45 : f32 to vector<8x32xf32>
    %97 = arith.subf %96, %90 : vector<8x32xf32>
    %98 = arith.mulf %97, %95 : vector<8x32xf32>
    %99 = arith.mulf %90, %70 : vector<8x32xf32>
    %100 = arith.addf %98, %99 : vector<8x32xf32>
    %101 = arith.addf %69, %100 : vector<8x32xf32>
    %c0_46 = arith.constant 0 : index
    %c0_47 = arith.constant 0 : index
    %102 = vector.load %arg4[%c0_46, %c0_47] : memref<8x32xf32, #tpu.memory_space<vmem>>, vector<8x32xf32>
    %c0_48 = arith.constant 0 : index
    %c0_49 = arith.constant 0 : index
    %103 = vector.load %arg14[%c0_48, %c0_49] : memref<32x128xf32, #tpu.memory_space<vmem>>, vector<32x128xf32>
    %cst_50 = arith.constant dense<0.000000e+00> : vector<8x128xf32>
    %104 = tpu.matmul %101, %103, %cst_50 {dimension_numbers = #tpu.dot_dimension_numbers<[1], [0], [0], [1], [0, 0, 1, 1], [], []>} : vector<8x32xf32>, vector<32x128xf32>, vector<8x128xf32> -> vector<8x128xf32>
    %c0_51 = arith.constant 0 : index
    %c0_52 = arith.constant 0 : index
    %105 = vector.load %arg15[%c0_51, %c0_52] : memref<32x128xf32, #tpu.memory_space<vmem>>, vector<32x128xf32>
    %cst_53 = arith.constant dense<0.000000e+00> : vector<8x128xf32>
    %106 = tpu.matmul %102, %105, %cst_53 {dimension_numbers = #tpu.dot_dimension_numbers<[1], [0], [0], [1], [0, 0, 1, 1], [], []>} : vector<8x32xf32>, vector<32x128xf32>, vector<8x128xf32> -> vector<8x128xf32>
    %107 = arith.addf %104, %106 : vector<8x128xf32>
    %c0_54 = arith.constant 0 : index
    %c0_55 = arith.constant 0 : index
    %108 = vector.load %arg16[%c0_54, %c0_55] : memref<1x128xf32, #tpu.memory_space<vmem>>, vector<1x128xf32>
    %109 = vector.broadcast %108 : vector<1x128xf32> to vector<8x128xf32>
    %110 = arith.addf %107, %109 : vector<8x128xf32>
    %111 = vector.extract_strided_slice %110 {offsets = [0, 0], sizes = [8, 32], strides = [1, 1]} : vector<8x128xf32> to vector<8x32xf32>
    %112 = arith.negf %111 : vector<8x32xf32>
    %113 = math.exp %112 : vector<8x32xf32>
    %cst_56 = arith.constant 1.000000e+00 : f32
    %114 = vector.broadcast %cst_56 : f32 to vector<8x32xf32>
    %115 = arith.addf %114, %113 : vector<8x32xf32>
    %116 = arith.divf %114, %115 : vector<8x32xf32>
    %117 = vector.extract_strided_slice %110 {offsets = [0, 32], sizes = [8, 32], strides = [1, 1]} : vector<8x128xf32> to vector<8x32xf32>
    %118 = arith.negf %117 : vector<8x32xf32>
    %119 = math.exp %118 : vector<8x32xf32>
    %cst_57 = arith.constant 1.000000e+00 : f32
    %120 = vector.broadcast %cst_57 : f32 to vector<8x32xf32>
    %121 = arith.addf %120, %119 : vector<8x32xf32>
    %122 = arith.divf %120, %121 : vector<8x32xf32>
    %123 = vector.extract_strided_slice %110 {offsets = [0, 64], sizes = [8, 32], strides = [1, 1]} : vector<8x128xf32> to vector<8x32xf32>
    %124 = vector.extract_strided_slice %110 {offsets = [0, 96], sizes = [8, 32], strides = [1, 1]} : vector<8x128xf32> to vector<8x32xf32>
    %125 = arith.mulf %116, %124 : vector<8x32xf32>
    %126 = arith.addf %123, %125 : vector<8x32xf32>
    %127 = math.tanh %126 : vector<8x32xf32>
    %cst_58 = arith.constant 1.000000e+00 : f32
    %128 = vector.broadcast %cst_58 : f32 to vector<8x32xf32>
    %129 = arith.subf %128, %122 : vector<8x32xf32>
    %130 = arith.mulf %129, %127 : vector<8x32xf32>
    %131 = arith.mulf %122, %102 : vector<8x32xf32>
    %132 = arith.addf %130, %131 : vector<8x32xf32>
    %133 = arith.addf %101, %132 : vector<8x32xf32>
    %c0_59 = arith.constant 0 : index
    %c0_60 = arith.constant 0 : index
    %134 = vector.load %arg19[%c0_59, %c0_60] : memref<32x32xf32, #tpu.memory_space<vmem>>, vector<32x32xf32>
    %cst_61 = arith.constant dense<0.000000e+00> : vector<8x32xf32>
    %135 = tpu.matmul %133, %134, %cst_61 {dimension_numbers = #tpu.dot_dimension_numbers<[1], [0], [0], [1], [0, 0, 1, 1], [], []>} : vector<8x32xf32>, vector<32x32xf32>, vector<8x32xf32> -> vector<8x32xf32>
    %c0_62 = arith.constant 0 : index
    %c0_63 = arith.constant 0 : index
    %136 = vector.load %arg20[%c0_62, %c0_63] : memref<1x32xf32, #tpu.memory_space<vmem>>, vector<1x32xf32>
    %137 = vector.broadcast %136 : vector<1x32xf32> to vector<8x32xf32>
    %138 = arith.addf %135, %137 : vector<8x32xf32>
    %139 = tpu.concatenate %138, %36, %100, %132 in 1 : vector<8x32xf32>, vector<8x32xf32>, vector<8x32xf32>, vector<8x32xf32> -> vector<8x128xf32>
    %c0_64 = arith.constant 0 : index
    %c0_65 = arith.constant 0 : index
    %140 = vector.load %arg21[%c0_64, %c0_65] : memref<8x128xf32, #tpu.memory_space<vmem>>, vector<8x128xf32>
    tpu.vector_store %arg21[%c0_64, %c0_65], %139 {strides = array<i32>} : memref<8x128xf32, #tpu.memory_space<vmem>>, vector<8x128xf32>,
    return
  }
}

</mosaic_0001>

<bundles_post_ra>
// kernel: tpu_custom_call.1
= control target key start
LH: loop header
LB: loop body
LE: loop exit
PB: predicated region body
PF: predicated region fallthrough
CT: control target
= control target key end

     0   :  { %s3009_s0 = inlined_call_operand.hbm [shape: f32[8,16], index: 0, kind: input, shape index: {}]   ;;  %s3010_s1 = inlined_call_operand.hbm [shape: f32[8,8,32], index: 1, kind: input, shape index: {}]   ;;  %s3011_s2 = inlined_call_operand.hbm [shape: f32[8,32], index: 2, kind: input, shape index: {}]   ;;  %s3012_s3 = inlined_call_operand.hbm [shape: f32[8,32], index: 3, kind: input, shape index: {}]   ;;  %s3013_s4 = inlined_call_operand.hbm [shape: f32[8,32], index: 4, kind: input, shape index: {}]   ;;  %s3014_s5 = inlined_call_operand.hbm [shape: f32[32,32], index: 5, kind: input, shape index: {}]   ;;  %s3015_s6 = inlined_call_operand.hbm [shape: f32[1,32], index: 6, kind: input, shape index: {}]   ;;  %s3016_s7 = inlined_call_operand.hbm [shape: f32[32,64], index: 7, kind: input, shape index: {}]   ;;  %s3017_s8 = inlined_call_operand.hbm [shape: f32[16,128], index: 8, kind: input, shape index: {}]   ;;  %s3018_s9 = inlined_call_operand.vmem [shape: f32[32,128], index: 9, kind: input, shape index: {}]   ;;  %s3019_s10 = inlined_call_operand.hbm [shape: f32[1,128], index: 10, kind: input, shape index: {}]   ;;  %s3020_s11 = inlined_call_operand.hbm [shape: f32[32,128], index: 11, kind: input, shape index: {}]   ;;  %s3021_s12 = inlined_call_operand.hbm [shape: f32[32,128], index: 12, kind: input, shape index: {}]   ;;  %s3022_s13 = inlined_call_operand.hbm [shape: f32[1,128], index: 13, kind: input, shape index: {}]   ;;  %s3023_s14 = inlined_call_operand.hbm [shape: f32[32,128], index: 14, kind: input, shape index: {}]   ;;  %s3024_s15 = inlined_call_operand.hbm [shape: f32[32,128], index: 15, kind: input, shape index: {}]   ;;  %s3025_s16 = inlined_call_operand.hbm [shape: f32[1,128], index: 16, kind: input, shape index: {}]   ;;  %s3026_s17 = inlined_call_operand.vmem [shape: f32[32,32], index: 17, kind: input, shape index: {}]   ;;  %s3027_s18 = inlined_call_operand.vmem [shape: f32[1,32], index: 18, kind: input, shape index: {}]   ;;  %s3028_s19 = inlined_call_operand.hbm [shape: f32[32,32], index: 19, kind: input, shape index: {}]   ;;  %s3029_s20 = inlined_call_operand.vmem [shape: f32[1,32], index: 20, kind: input, shape index: {}]   ;;  %s3030_s21 = inlined_call_operand.hbm [shape: f32[8,128], index: 21, kind: output, shape index: {}]  }
   0x1   :  { %3038 = sst [smem:[#allocation40_spill]] %s3009_s0 }
   0x2   :  { %3039 = sst [smem:[#allocation41_spill]] %s3010_s1 }
   0x3   :  { %3040 = sst [smem:[#allocation42_spill]] %s3011_s2 }
   0x4   :  { %3041 = sst [smem:[#allocation43_spill]] %s3012_s3 }
   0x5   :  { %3042 = sst [smem:[#allocation44_spill]] %s3013_s4 }
   0x6   :  { %3043 = sst [smem:[#allocation45_spill]] %s3014_s5 }
   0x7   :  { %3044 = sst [smem:[#allocation46_spill]] %s3027_s18 }
   0x8   :  { %3045 = sst [smem:[#allocation47_spill]] %s3029_s20 }
   0x9   :  { %3046 = sst [smem:[#allocation48_spill]] %s3030_s21 }
   0xa   :  { %26 = vsyncpa [#allocation3], 0 }
   0xb   :  { %27 = vsyncpa [#allocation6], 0 }
   0xc   :  { %28 = vsyncpa [#allocation9], 0 }
   0xd   :  { %29 = vsyncpa [#allocation12], 0 }
   0xe   :  { %30 = vsyncpa [#allocation15], 0 }
   0xf   :  { %31 = vsyncpa [#allocation18], 0 }
  0x10   :  { %32 = vsyncpa [#allocation21], 0 }
  0x11   :  { %33 = vsyncpa [#allocation24], 0 }
  0x12   :  { %34 = vsyncpa [#allocation27], 0 }
  0x13   :  { %35 = vsyncpa [#allocation4], 0  ;;  %s2428_s2 = smov [#allocation5]   ;;  %s3047_s3 = sld [smem:[#allocation41_spill]] }
  0x14   :  { %s51_s25 = sshll.u32 %s2428_s2, 4  ;;  %s52_s25 = int_to_ptr.vmem [resolvable:$true] %s51_s25 }
  0x19   :  { %s2012_s28 = scalar_lea.hbm %s3047_s3, 1024 }
  0x1a   :  { %p2013_p0 = scmp.ne.s32.totalorder %s3047_s3, %s2012_s28  ;;  %p2016_p1 = scmp.lt.u32.totalorder %s2012_s28, %s3047_s3 }
  0x1c   :  { %p2018_p2 = pnand %p2016_p1, %p2013_p0 }
  0x1e   :  { %2021 = shalt.err (!%p2018_p2)
}
  0x1f   :  { %s2022_s5 = scalar_lea.vmem %s52_s25, 1024  ;;  %p2027_p4 = scmp.lt.s32.totalorder %s52_s25, %s52_s25 }
  0x20   :  { %p2023_p3 = scmp.ne.s32.totalorder %s52_s25, %s2022_s5  ;;  %p2028_p5 = scmp.lt.s32.totalorder %s2022_s5, %s2022_s5 }
  0x22   :  { %p2029_p6 = por %p2028_p5, %p2027_p4 }
  0x24   :  { %p2030_p7 = pnand %p2029_p6, %p2023_p3 }
  0x26   :  { %2033 = shalt.err (!%p2030_p7)
}
  0x27   :  { %s2429_s22 = smov 128   ;;  %s2430_s23 = smov 8  }
  0x28   :  { %57 = dma.hbm_to_vmem [thread:$0]  %s3047_s3, 1024, %s52_s25, [#allocation6], %s2429_s22, %s2429_s22, %s2430_s23  }
  0x29   :  { %s2431_s2 = smov [#allocation8]   ;;  %s2432_s27 = smov [#allocation11]  }
  0x2a   :  { %s74_s26 = sshll.u32 %s2431_s2, 4  ;;  %s93_s28 = sshll.u32 %s2432_s27, 4  ;;  %s75_s26 = int_to_ptr.vmem [resolvable:$true] %s74_s26  ;;  %s94_s28 = int_to_ptr.vmem [resolvable:$true] %s93_s28 }
  0x2b   :  { %s3048_s4 = sld [smem:[#allocation43_spill]] }
  0x31   :  { %s2034_s30 = scalar_lea.hbm %s3048_s4, 128 }
  0x32   :  { %p2035_p8 = scmp.ne.s32.totalorder %s3048_s4, %s2034_s30  ;;  %p2038_p9 = scmp.lt.u32.totalorder %s2034_s30, %s3048_s4 }
  0x34   :  { %p2040_p10 = pnand %p2038_p9, %p2035_p8 }
  0x36   :  { %2043 = shalt.err (!%p2040_p10)
}
  0x37   :  { %s2044_s25 = scalar_lea.vmem %s75_s26, 128  ;;  %p2049_p12 = scmp.lt.s32.totalorder %s75_s26, %s75_s26 }
  0x38   :  { %p2045_p11 = scmp.ne.s32.totalorder %s75_s26, %s2044_s25  ;;  %p2050_p13 = scmp.lt.s32.totalorder %s2044_s25, %s2044_s25 }
  0x3a   :  { %p2051_p0 = por %p2050_p13, %p2049_p12 }
  0x3c   :  { %p2052_p1 = pnand %p2051_p0, %p2045_p11 }
  0x3e   :  { %2055 = shalt.err (!%p2052_p1)
}
  0x3f   :  { %77 = dma.hbm_to_vmem [thread:$0]  %s3048_s4, 128, %s75_s26, [#allocation9]  }
  0x40   :  { %s3049_s2 = sld [smem:[#allocation45_spill]] }
  0x46   :  { %s2056_s27 = scalar_lea.hbm %s3049_s2, 512 }
  0x47   :  { %p2057_p2 = scmp.ne.s32.totalorder %s3049_s2, %s2056_s27  ;;  %p2060_p3 = scmp.lt.u32.totalorder %s2056_s27, %s3049_s2 }
  0x49   :  { %p2062_p4 = pnand %p2060_p3, %p2057_p2 }
  0x4b   :  { %2065 = shalt.err (!%p2062_p4)
}
  0x4c   :  { %s2066_s30 = scalar_lea.vmem %s94_s28, 512  ;;  %p2071_p6 = scmp.lt.s32.totalorder %s94_s28, %s94_s28 }
  0x4d   :  { %p2067_p5 = scmp.ne.s32.totalorder %s94_s28, %s2066_s30  ;;  %p2072_p7 = scmp.lt.s32.totalorder %s2066_s30, %s2066_s30 }
  0x4f   :  { %p2073_p8 = por %p2072_p7, %p2071_p6 }
  0x51   :  { %p2074_p9 = pnand %p2073_p8, %p2067_p5 }
  0x53   :  { %2077 = shalt.err (!%p2074_p9)
}
  0x54   :  { %99 = dma.hbm_to_vmem [thread:$0]  %s3049_s2, 512, %s94_s28, [#allocation12], %s2429_s22, %s2429_s22, %s2430_s23  }
  0x55   :  { %s2433_s5 = smov [#allocation14]   ;;  %s2434_s3 = smov [#allocation17]  }
  0x56   :  { %s115_s25 = sshll.u32 %s2433_s5, 4  ;;  %s142_s1 = sshll.u32 %s2434_s3, 4  ;;  %s116_s25 = int_to_ptr.vmem [resolvable:$true] %s115_s25  ;;  %s143_s1 = int_to_ptr.vmem [resolvable:$true] %s142_s1 }
  0x57   :  { %s2078_s27 = scalar_lea.hbm %s3016_s7, 512 }
  0x58   :  { %p2079_p10 = scmp.ne.s32.totalorder %s3016_s7, %s2078_s27  ;;  %p2082_p11 = scmp.lt.u32.totalorder %s2078_s27, %s3016_s7 }
  0x5a   :  { %p2084_p12 = pnand %p2082_p11, %p2079_p10 }
  0x5c   :  { %2087 = shalt.err (!%p2084_p12)
}
  0x5d   :  { %s2088_s28 = scalar_lea.vmem %s116_s25, 512  ;;  %p2093_p0 = scmp.lt.s32.totalorder %s116_s25, %s116_s25 }
  0x5e   :  { %p2089_p13 = scmp.ne.s32.totalorder %s116_s25, %s2088_s28  ;;  %p2094_p1 = scmp.lt.s32.totalorder %s2088_s28, %s2088_s28 }
  0x60   :  { %p2095_p2 = por %p2094_p1, %p2093_p0 }
  0x62   :  { %p2096_p3 = pnand %p2095_p2, %p2089_p13 }
  0x64   :  { %2099 = shalt.err (!%p2096_p3)
}
  0x65   :  { %121 = dma.hbm_to_vmem [thread:$0]  %s3016_s7, 512, %s116_s25, [#allocation15], %s2429_s22, %s2429_s22, %s2430_s23  }
  0x66   :  { %s2100_s5 = scalar_lea.hbm %s3019_s10, 16 }
  0x67   :  { %p2101_p4 = scmp.ne.s32.totalorder %s3019_s10, %s2100_s5  ;;  %p2104_p5 = scmp.lt.u32.totalorder %s2100_s5, %s3019_s10 }
  0x69   :  { %p2106_p6 = pnand %p2104_p5, %p2101_p4 }
  0x6b   :  { %2109 = shalt.err (!%p2106_p6)
}
  0x6c   :  { %s2110_s18 = scalar_lea.vmem %s143_s1, 16  ;;  %s2114_s20 = scalar_lea.vmem %s143_s1, 32 }
  0x6d   :  { %p2111_p7 = scmp.ne.s32.totalorder %s143_s1, %s2110_s18  ;;  %p2115_p8 = scmp.lt.s32.totalorder %s143_s1, %s143_s1 }
  0x6e   :  { %p2116_p9 = scmp.lt.s32.totalorder %s2114_s20, %s2110_s18 }
  0x70   :  { %p2117_p10 = por %p2116_p9, %p2115_p8 }
  0x72   :  { %p2118_p11 = pnand %p2117_p10, %p2111_p7 }
  0x74   :  { %2121 = shalt.err (!%p2118_p11)
}
  0x75   :  { %145 = dma.hbm_to_vmem [thread:$0]  %s3019_s10, 16, %s143_s1, [#allocation18]  }
  0x76   :  { %s2435_s29 = smov [#allocation20]   ;;  %s2436_s28 = smov [#allocation23]  }
  0x77   :  { %s163_s0 = sshll.u32 %s2435_s29, 4  ;;  %s185_s2 = sshll.u32 %s2436_s28, 4  ;;  %s164_s0 = int_to_ptr.vmem [resolvable:$true] %s163_s0  ;;  %s186_s2 = int_to_ptr.vmem [resolvable:$true] %s185_s2 }
  0x78   :  { %s2122_s4 = scalar_lea.hbm %s3021_s12, 512 }
  0x79   :  { %p2123_p12 = scmp.ne.s32.totalorder %s3021_s12, %s2122_s4  ;;  %p2126_p13 = scmp.lt.u32.totalorder %s2122_s4, %s3021_s12 }
  0x7b   :  { %p2128_p0 = pnand %p2126_p13, %p2123_p12 }
  0x7d   :  { %2131 = shalt.err (!%p2128_p0)
}
  0x7e   :  { %s2132_s10 = scalar_lea.vmem %s164_s0, 512  ;;  %p2137_p2 = scmp.lt.s32.totalorder %s164_s0, %s164_s0 }
  0x7f   :  { %p2133_p1 = scmp.ne.s32.totalorder %s164_s0, %s2132_s10  ;;  %p2138_p3 = scmp.lt.s32.totalorder %s2132_s10, %s2132_s10 }
  0x81   :  { %p2139_p4 = por %p2138_p3, %p2137_p2 }
  0x83   :  { %p2140_p5 = pnand %p2139_p4, %p2133_p1 }
  0x85   :  { %2143 = shalt.err (!%p2140_p5)
}
  0x86   :  { %169 = dma.hbm_to_vmem [thread:$0]  %s3021_s12, 512, %s164_s0, [#allocation21], %s2429_s22, %s2429_s22, %s2430_s23  }
  0x87   :  { %s2144_s7 = scalar_lea.hbm %s3023_s14, 512 }
  0x88   :  { %p2145_p6 = scmp.ne.s32.totalorder %s3023_s14, %s2144_s7  ;;  %p2148_p7 = scmp.lt.u32.totalorder %s2144_s7, %s3023_s14 }
  0x8a   :  { %p2150_p8 = pnand %p2148_p7, %p2145_p6 }
  0x8c   :  { %2153 = shalt.err (!%p2150_p8)
}
  0x8d   :  { %s2154_s26 = scalar_lea.vmem %s186_s2, 512  ;;  %p2159_p10 = scmp.lt.s32.totalorder %s186_s2, %s186_s2 }
  0x8e   :  { %p2155_p9 = scmp.ne.s32.totalorder %s186_s2, %s2154_s26  ;;  %p2160_p11 = scmp.lt.s32.totalorder %s2154_s26, %s2154_s26 }
  0x90   :  { %p2161_p12 = por %p2160_p11, %p2159_p10 }
  0x92   :  { %p2162_p13 = pnand %p2161_p12, %p2155_p9 }
  0x94   :  { %2165 = shalt.err (!%p2162_p13)
}
  0x95   :  { %191 = dma.hbm_to_vmem [thread:$0]  %s3023_s14, 512, %s186_s2, [#allocation24], %s2429_s22, %s2429_s22, %s2430_s23  }
  0x96   :  { %s2437_s4 = smov [#allocation26]   ;;  %s2438_s3 = smov [#allocation2]  }
  0x97   :  { %s210_s5 = sshll.u32 %s2437_s4, 4  ;;  %s42_s21 = sshll.u32 %s2438_s3, 4  ;;  %s211_s5 = int_to_ptr.vmem [resolvable:$true] %s210_s5  ;;  %s43_s21 = int_to_ptr.vmem [resolvable:$true] %s42_s21 }
  0x98   :  { %s2166_s1 = scalar_lea.hbm %s3025_s16, 16 }
  0x99   :  { %p2167_p0 = scmp.ne.s32.totalorder %s3025_s16, %s2166_s1  ;;  %p2170_p1 = scmp.lt.u32.totalorder %s2166_s1, %s3025_s16 }
  0x9b   :  { %p2172_p2 = pnand %p2170_p1, %p2167_p0 }
  0x9d   :  { %2175 = shalt.err (!%p2172_p2)
}
  0x9e   :  { %s2176_s14 = scalar_lea.vmem %s211_s5, 16  ;;  %s2180_s2 = scalar_lea.vmem %s211_s5, 32 }
  0x9f   :  { %p2177_p3 = scmp.ne.s32.totalorder %s211_s5, %s2176_s14  ;;  %p2181_p4 = scmp.lt.s32.totalorder %s211_s5, %s211_s5 }
  0xa0   :  { %p2182_p5 = scmp.lt.s32.totalorder %s2180_s2, %s2176_s14 }
  0xa2   :  { %p2183_p6 = por %p2182_p5, %p2181_p4 }
  0xa4   :  { %p2184_p7 = pnand %p2183_p6, %p2177_p3 }
  0xa6   :  { %2187 = shalt.err (!%p2184_p7)
}
  0xa7   :  { %213 = dma.hbm_to_vmem [thread:$0]  %s3025_s16, 16, %s211_s5, [#allocation27]  }
  0xa8   :  { %s3050_s26 = sld [smem:[#allocation40_spill]] }
  0xae   :  { %s2188_s12 = scalar_lea.hbm %s3050_s26, 128 }
  0xaf   :  { %p2189_p8 = scmp.ne.s32.totalorder %s3050_s26, %s2188_s12  ;;  %p2192_p9 = scmp.lt.u32.totalorder %s2188_s12, %s3050_s26 }
  0xb1   :  { %p2194_p10 = pnand %p2192_p9, %p2189_p8 }
  0xb3   :  { %2197 = shalt.err (!%p2194_p10)
}
  0xb4   :  { %s2198_s10 = scalar_lea.vmem %s43_s21, 128  ;;  %p2203_p12 = scmp.lt.s32.totalorder %s43_s21, %s43_s21 }
  0xb5   :  { %p2199_p11 = scmp.ne.s32.totalorder %s43_s21, %s2198_s10  ;;  %p2204_p13 = scmp.lt.s32.totalorder %s2198_s10, %s2198_s10 }
  0xb7   :  { %p2205_p0 = por %p2204_p13, %p2203_p12 }
  0xb9   :  { %p2206_p1 = pnand %p2205_p0, %p2199_p11 }
  0xbb   :  { %2209 = shalt.err (!%p2206_p1)
}
  0xbc   :  { %45 = dma.hbm_to_vmem [thread:$0]  %s3050_s26, 128, %s43_s21, [#allocation3]  }
  0xbd   :  { %s2439_s1 = smov [#allocation7]   ;;  %s2440_s18 = smov [#allocation10]  }
  0xbe   :  { %s64_s27 = sshll.u32 %s2439_s1, 4  ;;  %s84_s20 = sshll.u32 %s2440_s18, 4  ;;  %s65_s27 = int_to_ptr.vmem [resolvable:$true] %s64_s27  ;;  %s85_s20 = int_to_ptr.vmem [resolvable:$true] %s84_s20 }
  0xbf   :  { %s3051_s2 = sld [smem:[#allocation42_spill]] }
  0xc5   :  { %s2210_s25 = scalar_lea.hbm %s3051_s2, 128 }
  0xc6   :  { %p2211_p2 = scmp.ne.s32.totalorder %s3051_s2, %s2210_s25  ;;  %p2214_p3 = scmp.lt.u32.totalorder %s2210_s25, %s3051_s2 }
  0xc8   :  { %p2216_p4 = pnand %p2214_p3, %p2211_p2 }
  0xca   :  { %2219 = shalt.err (!%p2216_p4)
}
  0xcb   :  { %s2220_s21 = scalar_lea.vmem %s65_s27, 128  ;;  %p2225_p6 = scmp.lt.s32.totalorder %s65_s27, %s65_s27 }
  0xcc   :  { %p2221_p5 = scmp.ne.s32.totalorder %s65_s27, %s2220_s21  ;;  %p2226_p7 = scmp.lt.s32.totalorder %s2220_s21, %s2220_s21 }
  0xce   :  { %p2227_p8 = por %p2226_p7, %p2225_p6 }
  0xd0   :  { %p2228_p9 = pnand %p2227_p8, %p2221_p5 }
  0xd2   :  { %2231 = shalt.err (!%p2228_p9)
}
  0xd3   :  { %67 = dma.hbm_to_vmem [thread:$0]  %s3051_s2, 128, %s65_s27, [#allocation6]  }
  0xd4   :  { %s3052_s24 = sld [smem:[#allocation44_spill]] }
  0xda   :  { %s2232_s10 = scalar_lea.hbm %s3052_s24, 128 }
  0xdb   :  { %p2233_p10 = scmp.ne.s32.totalorder %s3052_s24, %s2232_s10  ;;  %p2236_p11 = scmp.lt.u32.totalorder %s2232_s10, %s3052_s24 }
  0xdd   :  { %p2238_p12 = pnand %p2236_p11, %p2233_p10 }
  0xdf   :  { %2241 = shalt.err (!%p2238_p12)
}
  0xe0   :  { %s2242_s7 = scalar_lea.vmem %s85_s20, 128  ;;  %p2247_p0 = scmp.lt.s32.totalorder %s85_s20, %s85_s20 }
  0xe1   :  { %p2243_p13 = scmp.ne.s32.totalorder %s85_s20, %s2242_s7  ;;  %p2248_p1 = scmp.lt.s32.totalorder %s2242_s7, %s2242_s7 }
  0xe3   :  { %p2249_p2 = por %p2248_p1, %p2247_p0 }
  0xe5   :  { %p2250_p3 = pnand %p2249_p2, %p2243_p13 }
  0xe7   :  { %2253 = shalt.err (!%p2250_p3)
}
  0xe8   :  { %87 = dma.hbm_to_vmem [thread:$0]  %s3052_s24, 128, %s85_s20, [#allocation9]  }
  0xe9   :  { %s2441_s2 = smov [#allocation13]   ;;  %s2442_s29 = smov [#allocation16]  }
  0xea   :  { %s106_s25 = sshll.u32 %s2441_s2, 4  ;;  %s127_s28 = sshll.u32 %s2442_s29, 4  ;;  %s107_s25 = int_to_ptr.vmem [resolvable:$true] %s106_s25  ;;  %s128_s28 = int_to_ptr.vmem [resolvable:$true] %s127_s28 }
  0xeb   :  { %s2254_s21 = scalar_lea.hbm %s3015_s6, 16 }
  0xec   :  { %p2255_p4 = scmp.ne.s32.totalorder %s3015_s6, %s2254_s21  ;;  %p2258_p5 = scmp.lt.u32.totalorder %s2254_s21, %s3015_s6 }
  0xee   :  { %p2260_p6 = pnand %p2258_p5, %p2255_p4 }
  0xf0   :  { %2263 = shalt.err (!%p2260_p6)
}
  0xf1   :  { %s2264_s20 = scalar_lea.vmem %s107_s25, 16  ;;  %s2268_s24 = scalar_lea.vmem %s107_s25, 32 }
  0xf2   :  { %p2265_p7 = scmp.ne.s32.totalorder %s107_s25, %s2264_s20  ;;  %p2269_p8 = scmp.lt.s32.totalorder %s107_s25, %s107_s25 }
  0xf3   :  { %p2270_p9 = scmp.lt.s32.totalorder %s2268_s24, %s2264_s20 }
  0xf5   :  { %p2271_p10 = por %p2270_p9, %p2269_p8 }
  0xf7   :  { %p2272_p11 = pnand %p2271_p10, %p2265_p7 }
  0xf9   :  { %2275 = shalt.err (!%p2272_p11)
}
  0xfa   :  { %109 = dma.hbm_to_vmem [thread:$0]  %s3015_s6, 16, %s107_s25, [#allocation12]  }
  0xfb   :  { %s2276_s18 = scalar_lea.hbm %s3017_s8, 256 }
  0xfc   :  { %p2277_p12 = scmp.ne.s32.totalorder %s3017_s8, %s2276_s18  ;;  %p2280_p13 = scmp.lt.u32.totalorder %s2276_s18, %s3017_s8 }
  0xfe   :  { %p2282_p0 = pnand %p2280_p13, %p2277_p12 }
 0x100   :  { %2285 = shalt.err (!%p2282_p0)
}
 0x101   :  { %s2286_s29 = scalar_lea.vmem %s128_s28, 256  ;;  %p2291_p2 = scmp.lt.s32.totalorder %s128_s28, %s128_s28 }
 0x102   :  { %p2287_p1 = scmp.ne.s32.totalorder %s128_s28, %s2286_s29  ;;  %p2292_p3 = scmp.lt.s32.totalorder %s2286_s29, %s2286_s29 }
 0x104   :  { %p2293_p4 = por %p2292_p3, %p2291_p2 }
 0x106   :  { %p2294_p5 = pnand %p2293_p4, %p2287_p1 }
 0x108   :  { %2297 = shalt.err (!%p2294_p5)
}
 0x109   :  { %133 = dma.hbm_to_vmem [thread:$0]  %s3017_s8, 256, %s128_s28, [#allocation15], %s2429_s22, %s2429_s22, %s2430_s23  }
 0x10a   :  { %s2443_s30 = smov [#allocation19]   ;;  %s2444_s21 = smov [#allocation22]  }
 0x10b   :  { %s151_s12 = sshll.u32 %s2443_s30, 4  ;;  %s176_s26 = sshll.u32 %s2444_s21, 4  ;;  %s152_s12 = int_to_ptr.vmem [resolvable:$true] %s151_s12  ;;  %s177_s26 = int_to_ptr.vmem [resolvable:$true] %s176_s26 }
 0x10c   :  { %s2298_s3 = scalar_lea.hbm %s3020_s11, 512 }
 0x10d   :  { %p2299_p6 = scmp.ne.s32.totalorder %s3020_s11, %s2298_s3  ;;  %p2302_p7 = scmp.lt.u32.totalorder %s2298_s3, %s3020_s11 }
 0x10f   :  { %p2304_p8 = pnand %p2302_p7, %p2299_p6 }
 0x111   :  { %2307 = shalt.err (!%p2304_p8)
}
 0x112   :  { %s2308_s8 = scalar_lea.vmem %s152_s12, 512  ;;  %p2313_p10 = scmp.lt.s32.totalorder %s152_s12, %s152_s12 }
 0x113   :  { %p2309_p9 = scmp.ne.s32.totalorder %s152_s12, %s2308_s8  ;;  %p2314_p11 = scmp.lt.s32.totalorder %s2308_s8, %s2308_s8 }
 0x115   :  { %p2315_p12 = por %p2314_p11, %p2313_p10 }
 0x117   :  { %p2316_p13 = pnand %p2315_p12, %p2309_p9 }
 0x119   :  { %2319 = shalt.err (!%p2316_p13)
}
 0x11a   :  { %157 = dma.hbm_to_vmem [thread:$0]  %s3020_s11, 512, %s152_s12, [#allocation18], %s2429_s22, %s2429_s22, %s2430_s23  }
 0x11b   :  { %s2320_s7 = scalar_lea.hbm %s3022_s13, 16 }
 0x11c   :  { %p2321_p0 = scmp.ne.s32.totalorder %s3022_s13, %s2320_s7  ;;  %p2324_p1 = scmp.lt.u32.totalorder %s2320_s7, %s3022_s13 }
 0x11e   :  { %p2326_p2 = pnand %p2324_p1, %p2321_p0 }
 0x120   :  { %2329 = shalt.err (!%p2326_p2)
}
 0x121   :  { %s2330_s6 = scalar_lea.vmem %s177_s26, 16  ;;  %s2334_s25 = scalar_lea.vmem %s177_s26, 32 }
 0x122   :  { %p2331_p3 = scmp.ne.s32.totalorder %s177_s26, %s2330_s6  ;;  %p2335_p4 = scmp.lt.s32.totalorder %s177_s26, %s177_s26 }
 0x123   :  { %p2336_p5 = scmp.lt.s32.totalorder %s2334_s25, %s2330_s6 }
 0x125   :  { %p2337_p6 = por %p2336_p5, %p2335_p4 }
 0x127   :  { %p2338_p7 = pnand %p2337_p6, %p2331_p3 }
 0x129   :  { %2341 = shalt.err (!%p2338_p7)
}
 0x12a   :  { %179 = dma.hbm_to_vmem [thread:$0]  %s3022_s13, 16, %s177_s26, [#allocation21]  }
 0x12b   :  { %s2445_s12 = smov [#allocation25]   ;;  %s2446_s0 = smov [#allocation28]  }
 0x12c   :  { %s197_s21 = sshll.u32 %s2445_s12, 4  ;;  %s223_s4 = sshll.u32 %s2446_s0, 4  ;;  %s198_s21 = int_to_ptr.vmem [resolvable:$true] %s197_s21  ;;  %s224_s4 = int_to_ptr.vmem [resolvable:$true] %s223_s4 }
 0x12d   :  { %s2342_s24 = scalar_lea.hbm %s3024_s15, 512 }
 0x12e   :  { %p2343_p8 = scmp.ne.s32.totalorder %s3024_s15, %s2342_s24  ;;  %p2346_p9 = scmp.lt.u32.totalorder %s2342_s24, %s3024_s15 }
 0x130   :  { %p2348_p10 = pnand %p2346_p9, %p2343_p8 }
 0x132   :  { %2351 = shalt.err (!%p2348_p10)
}
 0x133   :  { %s2352_s13 = scalar_lea.vmem %s198_s21, 512  ;;  %p2357_p12 = scmp.lt.s32.totalorder %s198_s21, %s198_s21 }
 0x134   :  { %p2353_p11 = scmp.ne.s32.totalorder %s198_s21, %s2352_s13  ;;  %p2358_p13 = scmp.lt.s32.totalorder %s2352_s13, %s2352_s13 }
 0x136   :  { %p2359_p0 = por %p2358_p13, %p2357_p12 }
 0x138   :  { %p2360_p1 = pnand %p2359_p0, %p2353_p11 }
 0x13a   :  { %2363 = shalt.err (!%p2360_p1)
}
 0x13b   :  { %203 = dma.hbm_to_vmem [thread:$0]  %s3024_s15, 512, %s198_s21, [#allocation24], %s2429_s22, %s2429_s22, %s2430_s23  }
 0x13c   :  { %s2364_s7 = scalar_lea.hbm %s3028_s19, 512 }
 0x13d   :  { %p2365_p2 = scmp.ne.s32.totalorder %s3028_s19, %s2364_s7  ;;  %p2368_p3 = scmp.lt.u32.totalorder %s2364_s7, %s3028_s19 }
 0x13f   :  { %p2370_p4 = pnand %p2368_p3, %p2365_p2 }
 0x141   :  { %2373 = shalt.err (!%p2370_p4)
}
 0x142   :  { %s2374_s6 = scalar_lea.vmem %s224_s4, 512  ;;  %p2379_p6 = scmp.lt.s32.totalorder %s224_s4, %s224_s4 }
 0x143   :  { %p2375_p5 = scmp.ne.s32.totalorder %s224_s4, %s2374_s6  ;;  %p2380_p7 = scmp.lt.s32.totalorder %s2374_s6, %s2374_s6 }
 0x145   :  { %p2381_p8 = por %p2380_p7, %p2379_p6 }
 0x147   :  { %p2382_p9 = pnand %p2381_p8, %p2375_p5 }
 0x149   :  { %2385 = shalt.err (!%p2382_p9)
}
 0x14a   :  { %229 = dma.hbm_to_vmem [thread:$0]  %s3028_s19, 512, %s224_s4, [#allocation27], %s2429_s22, %s2429_s22, %s2430_s23  }
 0x14b   :  { %2408 = dma.done.wait [#allocation3], 128  }
 0x14c   :  { %2409 = vsyncadd [#allocation3], 4294967168 }
 0x14d   :  { %2410 = dma.done.wait [#allocation6], 1152  }
 0x14e   :  { %2411 = vsyncadd [#allocation6], 4294966144 }
 0x14f   :  { %2412 = dma.done.wait [#allocation9], 256  }
 0x150   :  { %2413 = vsyncadd [#allocation9], 4294967040 }
 0x151   :  { %2414 = dma.done.wait [#allocation12], 528  }
 0x152   :  { %2415 = vsyncadd [#allocation12], 4294966768 }
 0x153   :  { %2416 = dma.done.wait [#allocation15], 768  }
 0x154   :  { %2417 = vsyncadd [#allocation15], 4294966528 }
 0x155   :  { %2418 = dma.done.wait [#allocation18], 528  }
 0x156   :  { %2419 = vsyncadd [#allocation18], 4294966768 }
 0x157   :  { %2420 = dma.done.wait [#allocation21], 528  }
 0x158   :  { %2421 = vsyncadd [#allocation21], 4294966768 }
 0x159   :  { %2422 = dma.done.wait [#allocation24], 1024  }
 0x15a   :  { %2423 = vsyncadd [#allocation24], 4294966272 }
 0x15b   :  { %2424 = dma.done.wait [#allocation27], 528  }
 0x15c   :  { %2425 = vsyncadd [#allocation27], 4294966768  ;;  %v2447_v0 = vmov 0.0|0.0   ;;  %vm2448_vm0 = vmmov 0   ;;  %v2449_v1 = vmov 0.0   ;;  %v429_v2 = vld [vmem:[%s3018_s9] sm:$0xff] }
 0x15d   :  { %1868 = vmatprep.subr.bf16.mxu1 %v2447_v0  ;;  %1773 = vmatprep.mubr.msk.f32.mxu1 %vm2448_vm0, %v2449_v1  ;;  %v430_v3 = vld [vmem:[%s3018_s9 + $0x8] sm:$0xff]  ;;  %v431_v4 = vld [vmem:[%s3018_s9 + $0x10] sm:$0xff]  ;;  %v432_v6 = vld [vmem:[%s3018_s9 + $0x18] sm:$0xff]  ;;  %vm295_vm1 = vcmask 261120   ;;  %vm506_vm2 = vcmask 130048   ;;  %s2450_s9 = smov 32  }
 0x15e   :  { %v1869_v5 = vpack.c.bf16 %v430_v3, %v429_v2  ;;  %v1872_v7 = vpack.c.bf16 %v432_v6, %v431_v4  ;;  %v427_v8 = vld [vmem:[#allocation16] sm:$0xff]  ;;  %v428_v9 = vld [vmem:[#allocation16 + $0x8] sm:$0xff]  ;;  %v1674_v16 = vld [vmem:[#allocation17] ss:$0 sm:$0xff]  ;;  %s2451_s4 = smov 64   ;;  %s2452_s3 = smov 96   ;;  %v700_v4 = vlaneseq }
 0x15f   :  { %v426_v10 = vld [vmem:[#allocation7] sm:$0xff]  ;;  %v1875_v11 = vpack.c.bf16 %v428_v9, %v427_v8  ;;  %v425_v12 = vld [vmem:[#allocation2] sm:$0xff]  ;;  %v293_v30 = vld [vmem:[#allocation11 + $0x10] sm:$0xff]  ;;  %v2453_v2 = vmov 1966171168   ;;  %vm1052_vm3 = vcmask 1041409  }
 0x160   :  { %1870 = vmatpush3.bf16.msra.mxu1 %v1869_v5  ;;  %v291_v28 = vld [vmem:[#allocation11] sm:$0xff]  ;;  %v292_v29 = vld [vmem:[#allocation11 + $0x8] sm:$0xff]  ;;  %v294_v32 = vld [vmem:[#allocation11 + $0x18] sm:$0xff]  ;;  %v698_v3 = vunpack.c.l.s4 %v2453_v2  ;;  %v701_v6 = vshrl.u32 %v700_v4, 7  ;;  %vm1054_vm4 = vcmask 1042434   ;;  %vm1056_vm5 = vcmask 1043459  }
 0x161   :  { %1871 = vmatprep.subr.bf16.mxu1 %v2447_v0  ;;  %v1860_v31 = vpack.c.bf16 %v292_v29, %v291_v28  ;;  %v616_v33 = vld [vmem:[#allocation14] sm:$0xff]  ;;  %v617_v34 = vld [vmem:[#allocation14 + $0x8] sm:$0xff]  ;;  %v1864_v35 = vpack.c.bf16 %v294_v32, %v293_v30  ;;  %v618_v38 = vld [vmem:[#allocation14 + $0x10] sm:$0xff]  ;;  %vm1058_vm6 = vcmask 1044484   ;;  %vm1060_vm7 = vcmask 1045509   ;;  %s3053_s1 = sld [smem:[#allocation46_spill]] }
 0x162   :  { %v1878_v36 = vpack.c.bf16 %v617_v34, %v616_v33  ;;  %v2821_v37 = vld [vmem:[#allocation5] sm:$0xff]  ;;  %v619_v39 = vld [vmem:[#allocation14 + $0x18] sm:$0xff]  ;;  %v2827_v42 = vld [vmem:[#allocation5 + $0x8] sm:$0xff]  ;;  %v699_v5 = vunpack.c.0.s8 %v698_v3  ;;  %vm1062_vm8 = vcmask 1046534   ;;  %vm1064_vm9 = vcmask 1047559   ;;  %s3054_s27 = sld [smem:[#allocation47_spill]] }
 0x163   :  { %1861 = vmatprep.subr.bf16.mxu0 %v1860_v31  ;;  %1753 = vmatprep.mubr.msk.f32.mxu0 %vm295_vm1, %v2821_v37  ;;  %v1881_v41 = vpack.c.bf16 %v619_v39, %v618_v38  ;;  %v2834_v43 = vld [vmem:[#allocation5 + $0x10] sm:$0xff]  ;;  %v2838_v44 = vld [vmem:[#allocation5 + $0x18] sm:$0xff]  ;;  %v2840_v45 = vld [vmem:[#allocation5 + $0x20] sm:$0xff]  ;;  %vm1636_vm10 = vcmask 523264   ;;  %s2454_s14 = smov [#allocation29]   ;;  %vm1638_vm11 = vcmask 785408  }
 0x164   :  { %1873 = vmatpush3.bf16.msra.mxu1 %v1872_v7  ;;  %1863 = vmatpush3.bf16.msra.mxu0 %v1860_v31  ;;  %v2846_v46 = vld [vmem:[#allocation5 + $0x28] sm:$0xff]  ;;  %v2848_v47 = vld [vmem:[#allocation5 + $0x30] sm:$0xff]  ;;  %v2854_v49 = vld [vmem:[#allocation5 + $0x38] sm:$0xff]  ;;  %v702_v7 = vsub.s32 %v699_v5, %v701_v6  ;;  %s1647_s2 = sshll.u32 %s2454_s14, 4  ;;  %s1648_s2 = int_to_ptr.vmem [resolvable:$true] %s1647_s2 }
 0x165   :  { %1874 = vmatprep.subr.bf16.mxu1 %v2447_v0  ;;  %1865 = vmatprep.subr.bf16.mxu0 %v1864_v35  ;;  %s2386_s29 = scalar_lea.vmem %s1648_s2, 128  ;;  %p2391_p11 = scmp.lt.s32.totalorder %s1648_s2, %s1648_s2 }
 0x166   :  { %p2387_p10 = scmp.ne.s32.totalorder %s1648_s2, %s2386_s29  ;;  %p2392_p12 = scmp.lt.s32.totalorder %s2386_s29, %s2386_s29 }
 0x167   :  { %1774 = vmatmul.mubr.msk.f32.vlgmr.msra.gmra.mrb[0].mxu1 %vm295_vm1, %v426_v10 }
 0x168   :  { %1876 = vmatpush3.bf16.msra.mxu1 %v1875_v11  ;;  %1780 = vmatprep.mubr.msk.f32.mxu1 %vm2448_vm0, %v2449_v1  ;;  %v747_v11 = vsub.s32 0, %v701_v6  ;;  %p2393_p13 = por %p2392_p12, %p2391_p11 }
 0x169   :  { %1877 = vmatprep.subr.bf16.mxu1 %v2447_v0  ;;  %1867 = vmatpush3.bf16.msra.mxu0 %v1864_v35 }
 0x16a   :  { %1883 = vmatprep.subr.bf16.mxu0 %v2447_v0  ;;  %p2394_p0 = pnand %p2393_p13, %p2387_p10 }
 0x16b   :  { %1781 = vmatmul.mubr.msk.f32.vlgmr.msra.gmra.mrb[2].mxu1 %vm506_vm2, %v425_v12 }
 0x16c   :  { %1791 = vmatprep.mubr.msk.f32.mxu1 %vm2448_vm0, %v2449_v1  ;;  %1879 = vmatpush3.bf16.msra.mxu1 %v1878_v36 }
 0x16d   :  { %1880 = vmatprep.subr.bf16.mxu1 %v2447_v0  ;;  %1754 = vmatmul.mubr.msk.f32.vlgmr.msra.gmra.mrb[0].mxu0 %vm295_vm1, %v2827_v42 }
 0x16e   :  { %1756 = vmatprep.mubr.msk.f32.mxu0 %vm295_vm1, %v2834_v43 }
 0x170   :  { %1882 = vmatpush3.bf16.msra.mxu1 %v1881_v41  ;;  %v1677_v41 = vld [vmem:[#allocation13] ss:$0 sm:$0xff] }
 0x171   :  { %1889 = vmatprep.subr.bf16.mxu1 %v2447_v0  ;;  %1757 = vmatmul.mubr.msk.f32.gmra.mrb[2].mxu0 %vm295_vm1, %v2838_v44 }
 0x172   :  { %1759 = vmatprep.mubr.msk.f32.mxu0 %vm295_vm1, %v2840_v45 }
 0x175   :  { %1760 = vmatmul.mubr.msk.f32.gmra.mrb[4].mxu0 %vm295_vm1, %v2846_v46 }
 0x176   :  { %1762 = vmatprep.mubr.msk.f32.mxu0 %vm295_vm1, %v2848_v47 }
 0x179   :  { %1763 = vmatmul.mubr.msk.f32.gmra.mrb[6].mxu0 %vm295_vm1, %v2854_v49 }
 0x17a   :  { %1802 = vmatprep.mubr.msk.f32.mxu0 %vm2448_vm0, %v2449_v1 }
 0x23a   :  { %v502_v13 = vpop.f32.mrb[0].mxu1 }
 0x23b   :  { %v1775_v14 = vpop.f32.mrb[1].mxu1 }
 0x23e   :  { %v576_v15 = vpop.f32.mrb[2].mxu1 }
 0x23f   :  { %v577_v17 = vadd.f32 %v576_v15, %v502_v13  ;;  %v1782_v18 = vpop.f32.mrb[3].mxu1 }
 0x240   :  { %v1755_v56 = vpop.f32.mrb[0].mxu0 }
 0x241   :  { %v587_v19 = vadd.f32 %v1674_v16, %v577_v17  ;;  %v386_v57 = vpop.f32.mrb[1].mxu0 }
 0x243   :  { %595 = vrot.lane.b32.xlu0 %v587_v19, %s2450_s9  ;;  %v1675_v20 = vmul.f32 -1.442695, %v587_v19 }
 0x244   :  { %v1758_v58 = vpop.f32.mrb[2].mxu0 }
 0x245   :  { %1946 = vpow2.f32 %v1675_v20  ;;  %v396_v59 = vpop.f32.mrb[3].mxu0 }
 0x248   :  { %v1761_v60 = vpop.f32.mrb[4].mxu0 }
 0x249   :  { %v406_v61 = vpop.f32.mrb[5].mxu0 }
 0x24c   :  { %v1764_v62 = vpop.f32.mrb[6].mxu0 }
 0x24d   :  { %v416_v63 = vpop.f32.mrb[7].mxu0 }
 0x24f   :  { %v1947_v21 = vpop.eup %1946 }
 0x250   :  { %v591_v22 = vadd.f32 1.0, %v1947_v21 }
 0x252   :  { %1948 = vrcp.f32 %v591_v22 }
 0x25c   :  { %v1949_v23 = vpop.eup %1948 }
 0x25d   :  { %v605_v50 = vsub.f32 1.0, %v1949_v23 }
 0x2b5   :  { %v596_v24 = vpop.permute.xlu0 %595 }
 0x2b6   :  { %v598_v25 = vmul.f32 %v1949_v23, %v596_v24 }
 0x2b8   :  { %600 = vrot.lane.b32.xlu0 %v598_v25, %s2451_s4 }
 0x32a   :  { %v601_v26 = vpop.permute.xlu0 %600 }
 0x32b   :  { %v603_v27 = vadd.f32 %v601_v26, %v587_v19 }
 0x32d   :  { %1950 = vtanh.f32 %v603_v27 }
 0x337   :  { %v1951_v40 = vpop.eup %1950 }
 0x338   :  { %607 = vrot.lane.b32.xlu1 %v1951_v40, %s2452_s3 }
 0x33c   :  { %611 = vrot.lane.b32.xlu1 %v426_v10, %s2450_s9 }
 0x3aa   :  { %v608_v48 = vpop.permute.xlu1 %607 }
 0x3ab   :  { %v610_v52 = vmul.f32 %v608_v48, %v605_v50 }
 0x3ae   :  { %v612_v51 = vpop.permute.xlu1 %611 }
 0x3af   :  { %v614_v53 = vmul.f32 %v1949_v23, %v612_v51 }
 0x3b1   :  { %v2860_v54 = vadd.f32 %v614_v53, %v610_v52 }
 0x3b3   :  { %621 = vrot.lane.b32.xlu0 %v2860_v54, %s2452_s3 }
 0x425   :  { %v622_v55 = vpop.permute.xlu0 %621 }
 0x426   :  { %1792 = vmatmul.mubr.msk.f32.vlgmr.msra.gmra.mrb[4].mxu1 %vm295_vm1, %v622_v55 }
 0x427   :  { %1813 = vmatprep.mubr.msk.f32.mxu1 %vm2448_vm0, %v2449_v1 }
 0x4f9   :  { %v2867_v8 = vpop.f32.mrb[4].mxu1 }
 0x4fa   :  { %v696_v9 = vcombine.high %v2867_v8, %v2867_v8  ;;  %v703_v10 = vrot.slane %v2867_v8, %v702_v7  ;;  %v1793_v12 = vpop.f32.mrb[5].mxu1 }
 0x4fc   :  { %v710_v13 = vrot.slane %v696_v9, %v702_v7  ;;  %v711_v14 = vcombine.high %v703_v10, %v703_v10  ;;  %v719_v15 = vrot.slane %v703_v10, %v702_v7 }
 0x4fe   :  { %v733_v16 = vrot.slane %v711_v14, %v702_v7  ;;  %v748_v17 = vrot.slane %v719_v15, %v747_v11  ;;  %v741_v18 = vcombine.high %v719_v15, %v719_v15  ;;  %v712_v19 = vcombine.high %v710_v13, %v710_v13  ;;  %v1041_v14 = vld [vmem:[%s3026_s17 + $0x8] sm:$0xff]  ;;  %v1042_v15 = vld [vmem:[%s3026_s17 + $0x10] sm:$0xff] }
 0x4ff   :  { %v726_v20 = vrot.slane %v710_v13, %v702_v7  ;;  %v1040_v13 = vld [vmem:[%s3026_s17] sm:$0xff] }
 0x500   :  { %v752_v21 = vrot.slane %v733_v16, %v747_v11  ;;  %v785_v22 = vadd.f32 %v748_v17, %v386_v57  ;;  %v743_v23 = vcombine.high %v733_v16, %v733_v16  ;;  %v756_v24 = vrot.slane %v741_v18, %v747_v11  ;;  %v1043_v17 = vld [vmem:[%s3026_s17 + $0x18] sm:$0xff] }
 0x501   :  { %v740_v25 = vrot.slane %v712_v19, %v702_v7  ;;  %v764_v26 = vrot.slane %v726_v20, %v747_v11  ;;  %v742_v27 = vcombine.high %v726_v20, %v726_v20  ;;  %v1884_v16 = vpack.c.bf16 %v1041_v14, %v1040_v13 }
 0x502   :  { %v786_v28 = vadd.f32 %v1755_v56, %v752_v21  ;;  %1952 = vtanh.f32 %v785_v22  ;;  %v760_v29 = vrot.slane %v743_v23, %v747_v11  ;;  %v787_v30 = vadd.f32 %v756_v24, %v396_v59 }
 0x503   :  { %v768_v31 = vrot.slane %v740_v25, %v747_v11  ;;  %v789_v32 = vadd.f32 %v764_v26, %v406_v61  ;;  %v744_v33 = vcombine.high %v740_v25, %v740_v25  ;;  %v772_v34 = vrot.slane %v742_v27, %v747_v11  ;;  %1885 = vmatpush3.bf16.msra.mxu0 %v1884_v16 }
 0x504   :  { %1954 = vtanh.f32 %v786_v28  ;;  %v788_v35 = vadd.f32 %v1758_v58, %v760_v29  ;;  %v1887_v18 = vpack.c.bf16 %v1043_v17, %v1042_v15  ;;  %1886 = vmatprep.subr.bf16.mxu0 %v2447_v0 }
 0x505   :  { %1956 = vtanh.f32 %v787_v30  ;;  %v790_v36 = vadd.f32 %v1761_v60, %v768_v31  ;;  %v776_v38 = vrot.slane %v744_v33, %v747_v11  ;;  %v791_v39 = vadd.f32 %v772_v34, %v416_v63 }
 0x506   :  { %1958 = vtanh.f32 %v788_v35 }
 0x507   :  { %1960 = vtanh.f32 %v790_v36  ;;  %v792_v40 = vadd.f32 %v1764_v62, %v776_v38  ;;  %1888 = vmatpush3.bf16.msra.mxu0 %v1887_v18 }
 0x508   :  { %1962 = vtanh.f32 %v789_v32  ;;  %1895 = vmatprep.subr.bf16.mxu0 %v2447_v0 }
 0x509   :  { %1964 = vtanh.f32 %v792_v40 }
 0x50a   :  { %1966 = vtanh.f32 %v791_v39 }
 0x50c   :  { %v1953_v48 = vpop.eup %1952 }
 0x50d   :  { %v808_v50 = vmul.f32 %v1953_v48, %v1677_v41 }
 0x50e   :  { %v1955_v51 = vpop.eup %1954 }
 0x50f   :  { %v1957_v52 = vpop.eup %1956  ;;  %v816_v53 = vsel %vm295_vm1, %v808_v50, 0.0  ;;  %v809_v55 = vmul.f32 %v1955_v51, %v1677_v41 }
 0x510   :  { %v1959_v56 = vpop.eup %1958  ;;  %817 = vadd.xlane.f32.xlu1 %v816_v53  ;;  %v810_v60 = vmul.f32 %v1957_v52, %v1677_v41 }
 0x511   :  { %v1961_v57 = vpop.eup %1960  ;;  %v819_v58 = vsel %vm295_vm1, %v809_v55, 0.0  ;;  %v811_v59 = vmul.f32 %v1959_v56, %v1677_v41 }
 0x512   :  { %v1963_v61 = vpop.eup %1962  ;;  %820 = vadd.xlane.f32.xlu0 %v819_v58  ;;  %v813_v63 = vmul.f32 %v1961_v57, %v1677_v41  ;;  %v822_v3 = vsel %vm295_vm1, %v810_v60, 0.0 }
 0x513   :  { %v825_v62 = vsel %vm295_vm1, %v811_v59, 0.0  ;;  %v1965_v2 = vpop.eup %1964  ;;  %v812_v4 = vmul.f32 %v1963_v61, %v1677_v41 }
 0x514   :  { %826 = vadd.xlane.f32.xlu1 %v825_v62  ;;  %v1967_v5 = vpop.eup %1966  ;;  %v831_v6 = vsel %vm295_vm1, %v813_v63, 0.0  ;;  %v815_v7 = vmul.f32 %v1965_v2, %v1677_v41 }
 0x515   :  { %v828_v9 = vsel %vm295_vm1, %v812_v4, 0.0  ;;  %v814_v10 = vmul.f32 %v1967_v5, %v1677_v41 }
 0x516   :  { %823 = vadd.xlane.f32.xlu0 %v822_v3  ;;  %v837_v11 = vsel %vm295_vm1, %v815_v7, 0.0 }
 0x517   :  { %v834_v12 = vsel %vm295_vm1, %v814_v10, 0.0 }
 0x518   :  { %832 = vadd.xlane.f32.xlu1 %v831_v6 }
 0x51a   :  { %829 = vadd.xlane.f32.xlu0 %v828_v9 }
 0x51c   :  { %838 = vadd.xlane.f32.xlu1 %v837_v11 }
 0x51e   :  { %835 = vadd.xlane.f32.xlu0 %v834_v12 }
 0x59d   :  { %v818_v19 = vpop.xlane.xlu1 %817 }
 0x59e   :  { %v840_v20 = vrot.slane %v818_v19, 4 }
 0x59f   :  { %v821_v21 = vpop.xlane.xlu0 %820 }
 0x5a0   :  { %v841_v22 = vmax.f32 %v818_v19, %v840_v20  ;;  %v846_v23 = vrot.slane %v821_v21, 4 }
 0x5a1   :  { %v827_v24 = vpop.xlane.xlu1 %826 }
 0x5a2   :  { %v842_v25 = vrot.slane %v841_v22, 2  ;;  %v847_v26 = vmax.f32 %v821_v21, %v846_v23  ;;  %v858_v27 = vrot.slane %v827_v24, 4 }
 0x5a3   :  { %v824_v28 = vpop.xlane.xlu0 %823 }
 0x5a4   :  { %v843_v29 = vmax.f32 %v841_v22, %v842_v25  ;;  %v848_v30 = vrot.slane %v847_v26, 2  ;;  %v859_v31 = vmax.f32 %v827_v24, %v858_v27  ;;  %v852_v32 = vrot.slane %v824_v28, 4 }
 0x5a5   :  { %v833_v33 = vpop.xlane.xlu1 %832 }
 0x5a6   :  { %v844_v34 = vrot.slane %v843_v29, 1  ;;  %v849_v35 = vmax.f32 %v847_v26, %v848_v30  ;;  %v860_v36 = vrot.slane %v859_v31, 2  ;;  %v853_v38 = vmax.f32 %v824_v28, %v852_v32 }
 0x5a7   :  { %v870_v39 = vrot.slane %v833_v33, 4  ;;  %v830_v40 = vpop.xlane.xlu0 %829 }
 0x5a8   :  { %v845_v41 = vmax.f32 %v843_v29, %v844_v34  ;;  %v850_v48 = vrot.slane %v849_v35, 1  ;;  %v861_v50 = vmax.f32 %v859_v31, %v860_v36  ;;  %v854_v51 = vrot.slane %v853_v38, 2 }
 0x5a9   :  { %v871_v52 = vmax.f32 %v833_v33, %v870_v39  ;;  %v864_v53 = vrot.slane %v830_v40, 4  ;;  %v839_v55 = vpop.xlane.xlu1 %838 }
 0x5aa   :  { %v888_v56 = vsub.f32 %v818_v19, %v845_v41  ;;  %v851_v57 = vmax.f32 %v849_v35, %v850_v48  ;;  %v862_v58 = vrot.slane %v861_v50, 1  ;;  %v855_v59 = vmax.f32 %v853_v38, %v854_v51 }
 0x5ab   :  { %v872_v60 = vrot.slane %v871_v52, 2  ;;  %v865_v61 = vmax.f32 %v830_v40, %v864_v53  ;;  %v882_v62 = vrot.slane %v839_v55, 4  ;;  %v836_v63 = vpop.xlane.xlu0 %835 }
 0x5ac   :  { %v896_v2 = vmul.f32 1.442695, %v888_v56  ;;  %v889_v3 = vsub.f32 %v821_v21, %v851_v57  ;;  %v863_v4 = vmax.f32 %v861_v50, %v862_v58  ;;  %v856_v5 = vrot.slane %v855_v59, 1 }
 0x5ad   :  { %v873_v6 = vmax.f32 %v871_v52, %v872_v60  ;;  %v866_v7 = vrot.slane %v865_v61, 2  ;;  %v883_v9 = vmax.f32 %v839_v55, %v882_v62  ;;  %v876_v10 = vrot.slane %v836_v63, 4 }
 0x5ae   :  { %1968 = vpow2.f32 %v896_v2  ;;  %v898_v11 = vmul.f32 1.442695, %v889_v3  ;;  %v891_v12 = vsub.f32 %v827_v24, %v863_v4  ;;  %v857_v13 = vmax.f32 %v855_v59, %v856_v5 }
 0x5af   :  { %v874_v14 = vrot.slane %v873_v6, 1  ;;  %v867_v15 = vmax.f32 %v865_v61, %v866_v7  ;;  %v884_v16 = vrot.slane %v883_v9, 2  ;;  %v877_v17 = vmax.f32 %v836_v63, %v876_v10 }
 0x5b0   :  { %1970 = vpow2.f32 %v898_v11  ;;  %v902_v18 = vmul.f32 1.442695, %v891_v12  ;;  %v890_v19 = vsub.f32 %v824_v28, %v857_v13 }
 0x5b1   :  { %v875_v20 = vmax.f32 %v873_v6, %v874_v14  ;;  %v868_v22 = vrot.slane %v867_v15, 1  ;;  %v885_v21 = vmax.f32 %v883_v9, %v884_v16  ;;  %v878_v23 = vrot.slane %v877_v17, 2 }
 0x5b2   :  { %1972 = vpow2.f32 %v902_v18  ;;  %v900_v25 = vmul.f32 1.442695, %v890_v19 }
 0x5b3   :  { %v893_v26 = vsub.f32 %v833_v33, %v875_v20  ;;  %v869_v27 = vmax.f32 %v867_v15, %v868_v22  ;;  %v886_v29 = vrot.slane %v885_v21, 1  ;;  %v879_v30 = vmax.f32 %v877_v17, %v878_v23 }
 0x5b4   :  { %1974 = vpow2.f32 %v900_v25 }
 0x5b5   :  { %v906_v24 = vmul.f32 1.442695, %v893_v26  ;;  %v892_v31 = vsub.f32 %v830_v40, %v869_v27  ;;  %v887_v32 = vmax.f32 %v885_v21, %v886_v29  ;;  %v880_v34 = vrot.slane %v879_v30, 1 }
 0x5b7   :  { %1976 = vpow2.f32 %v906_v24  ;;  %v904_v35 = vmul.f32 1.442695, %v892_v31  ;;  %v895_v36 = vsub.f32 %v839_v55, %v887_v32  ;;  %v881_v38 = vmax.f32 %v879_v30, %v880_v34 }
 0x5b8   :  { %v2894_v28 = vpop.eup %1968 }
 0x5b9   :  { %v912_v39 = vrot.slane %v2894_v28, 4  ;;  %1978 = vpow2.f32 %v904_v35  ;;  %v910_v41 = vmul.f32 1.442695, %v895_v36  ;;  %v894_v48 = vsub.f32 %v836_v63, %v881_v38 }
 0x5ba   :  { %v2897_v33 = vpop.eup %1970 }
 0x5bb   :  { %v913_v50 = vadd.f32 %v2894_v28, %v912_v39  ;;  %v918_v51 = vrot.slane %v2897_v33, 4  ;;  %1980 = vpow2.f32 %v910_v41  ;;  %v908_v40 = vmul.f32 1.442695, %v894_v48 }
 0x5bc   :  { %v2901_v52 = vpop.eup %1972 }
 0x5bd   :  { %v914_v53 = vrot.slane %v913_v50, 2  ;;  %v919_v55 = vadd.f32 %v2897_v33, %v918_v51  ;;  %v930_v56 = vrot.slane %v2901_v52, 4  ;;  %1982 = vpow2.f32 %v908_v40 }
 0x5be   :  { %v2905_v57 = vpop.eup %1974 }
 0x5bf   :  { %v915_v58 = vadd.f32 %v914_v53, %v913_v50  ;;  %v920_v59 = vrot.slane %v919_v55, 2  ;;  %v931_v60 = vadd.f32 %v2901_v52, %v930_v56  ;;  %v924_v61 = vrot.slane %v2905_v57, 4 }
 0x5c1   :  { %v2909_v62 = vpop.eup %1976  ;;  %v916_v63 = vrot.slane %v915_v58, 1  ;;  %v921_v2 = vadd.f32 %v920_v59, %v919_v55  ;;  %v932_v3 = vrot.slane %v931_v60, 2  ;;  %v925_v4 = vadd.f32 %v2905_v57, %v924_v61 }
 0x5c2   :  { %v942_v5 = vrot.slane %v2909_v62, 4 }
 0x5c3   :  { %v2913_v6 = vpop.eup %1978  ;;  %v917_v7 = vadd.f32 %v916_v63, %v915_v58  ;;  %v922_v9 = vrot.slane %v921_v2, 1  ;;  %v933_v10 = vadd.f32 %v932_v3, %v931_v60  ;;  %v926_v11 = vrot.slane %v925_v4, 2 }
 0x5c4   :  { %v943_v12 = vadd.f32 %v2909_v62, %v942_v5  ;;  %v936_v13 = vrot.slane %v2913_v6, 4 }
 0x5c5   :  { %v2917_v14 = vpop.eup %1980  ;;  %1984 = vrcp.f32 %v917_v7  ;;  %v923_v15 = vadd.f32 %v922_v9, %v921_v2  ;;  %v934_v16 = vrot.slane %v933_v10, 1  ;;  %v927_v17 = vadd.f32 %v926_v11, %v925_v4 }
 0x5c6   :  { %v944_v18 = vrot.slane %v943_v12, 2  ;;  %v937_v19 = vadd.f32 %v2913_v6, %v936_v13  ;;  %v954_v20 = vrot.slane %v2917_v14, 4 }
 0x5c7   :  { %v2921_v22 = vpop.eup %1982  ;;  %1986 = vrcp.f32 %v923_v15  ;;  %v935_v21 = vadd.f32 %v934_v16, %v933_v10  ;;  %v928_v23 = vrot.slane %v927_v17, 1 }
 0x5c8   :  { %v945_v25 = vadd.f32 %v944_v18, %v943_v12  ;;  %v938_v26 = vrot.slane %v937_v19, 2  ;;  %v955_v27 = vadd.f32 %v2917_v14, %v954_v20  ;;  %v948_v29 = vrot.slane %v2921_v22, 4 }
 0x5c9   :  { %1988 = vrcp.f32 %v935_v21  ;;  %v929_v30 = vadd.f32 %v928_v23, %v927_v17 }
 0x5ca   :  { %v946_v24 = vrot.slane %v945_v25, 1  ;;  %v939_v31 = vadd.f32 %v938_v26, %v937_v19  ;;  %v956_v32 = vrot.slane %v955_v27, 2  ;;  %v949_v34 = vadd.f32 %v2921_v22, %v948_v29 }
 0x5cb   :  { %1990 = vrcp.f32 %v929_v30 }
 0x5cc   :  { %v947_v35 = vadd.f32 %v946_v24, %v945_v25  ;;  %v940_v36 = vrot.slane %v939_v31, 1  ;;  %v957_v38 = vadd.f32 %v956_v32, %v955_v27  ;;  %v950_v39 = vrot.slane %v949_v34, 2 }
 0x5ce   :  { %1992 = vrcp.f32 %v947_v35  ;;  %v941_v41 = vadd.f32 %v940_v36, %v939_v31  ;;  %v958_v48 = vrot.slane %v957_v38, 1  ;;  %v951_v50 = vadd.f32 %v950_v39, %v949_v34 }
 0x5cf   :  { %v1985_v51 = vpop.eup %1984 }
 0x5d0   :  { %v968_v40 = vmul.f32 %v1985_v51, %v2894_v28  ;;  %1994 = vrcp.f32 %v941_v41  ;;  %v959_v53 = vadd.f32 %v958_v48, %v957_v38  ;;  %v952_v55 = vrot.slane %v951_v50, 1 }
 0x5d1   :  { %v1987_v56 = vpop.eup %1986 }
 0x5d2   :  { %v976_v58 = vmul.f32 %v968_v40, %v2821_v37  ;;  %v969_v59 = vmul.f32 %v1987_v56, %v2897_v33  ;;  %v953_v60 = vadd.f32 %v952_v55, %v951_v50  ;;  %1996 = vrcp.f32 %v959_v53 }
 0x5d3   :  { %v1989_v61 = vpop.eup %1988 }
 0x5d4   :  { %v977_v63 = vmul.f32 %v969_v59, %v2827_v42  ;;  %v971_v2 = vmul.f32 %v1989_v61, %v2901_v52  ;;  %1998 = vrcp.f32 %v953_v60  ;;  %v984_v3 = vsel %vm295_vm1, %v976_v58, 0.0 }
 0x5d5   :  { %v1991_v4 = vpop.eup %1990  ;;  %v985_v28 = vrot.slane %v984_v3, 4 }
 0x5d6   :  { %v970_v5 = vmul.f32 %v1991_v4, %v2905_v57  ;;  %v979_v7 = vmul.f32 %v971_v2, %v2838_v44  ;;  %v991_v37 = vsel %vm295_vm1, %v977_v63, 0.0 }
 0x5d7   :  { %v986_v9 = vadd.f32 %v985_v28, %v984_v3  ;;  %v992_v33 = vrot.slane %v991_v37, 4 }
 0x5d8   :  { %v1993_v10 = vpop.eup %1992  ;;  %v978_v11 = vmul.f32 %v970_v5, %v2834_v43  ;;  %v1005_v42 = vsel %vm295_vm1, %v979_v7, 0.0 }
 0x5d9   :  { %v973_v52 = vmul.f32 %v1993_v10, %v2909_v62  ;;  %v987_v12 = vrot.slane %v986_v9, 2  ;;  %v993_v13 = vadd.f32 %v992_v33, %v991_v37  ;;  %v1006_v15 = vrot.slane %v1005_v42, 4 }
 0x5da   :  { %v1995_v16 = vpop.eup %1994  ;;  %v998_v17 = vsel %vm295_vm1, %v978_v11, 0.0 }
 0x5db   :  { %v972_v57 = vmul.f32 %v1995_v16, %v2913_v6  ;;  %v981_v44 = vmul.f32 %v973_v52, %v2846_v46  ;;  %v994_v18 = vrot.slane %v993_v13, 2  ;;  %v999_v20 = vrot.slane %v998_v17, 4 }
 0x5dc   :  { %v1997_v19 = vpop.eup %1996  ;;  %v1007_v21 = vadd.f32 %v1006_v15, %v1005_v42  ;;  %v988_v25 = vadd.f32 %v987_v12, %v986_v9 }
 0x5dd   :  { %v975_v43 = vmul.f32 %v1997_v19, %v2917_v14  ;;  %v980_v23 = vmul.f32 %v972_v57, %v2840_v45  ;;  %v995_v62 = vadd.f32 %v994_v18, %v993_v13  ;;  %v1000_v27 = vadd.f32 %v999_v20, %v998_v17  ;;  %v1679_v18 = vld [vmem:[%s3053_s1] ss:$0 sm:$0xff]  ;;  %v1158_v19 = vld [vmem:[#allocation20] sm:$0xff] }
 0x5de   :  { %v1999_v26 = vpop.eup %1998  ;;  %v1008_v29 = vrot.slane %v1007_v21, 2  ;;  %v1019_v30 = vsel %vm295_vm1, %v981_v44, 0.0  ;;  %v989_v35 = vrot.slane %v988_v25, 1  ;;  %1149 = vrot.lane.b32.xlu1 %v1679_v18, %s2450_s9  ;;  %v1159_v20 = vld [vmem:[#allocation20 + $0x8] sm:$0xff]  ;;  %v1686_v18 = vld [vmem:[#allocation26] ss:$0 sm:$0xff] }
 0x5df   :  { %v974_v24 = vmul.f32 %v1999_v26, %v2921_v22  ;;  %v983_v6 = vmul.f32 %v975_v43, %v2854_v49  ;;  %v996_v46 = vrot.slane %v995_v62, 1  ;;  %v1001_v31 = vrot.slane %v1000_v27, 2 }
 0x5e0   :  { %v1012_v32 = vsel %vm295_vm1, %v980_v23, 0.0  ;;  %v1020_v34 = vrot.slane %v1019_v30, 4  ;;  %v1009_v39 = vadd.f32 %v1008_v29, %v1007_v21  ;;  %v990_v55 = vadd.f32 %v989_v35, %v988_v25  ;;  %v1154_v21 = vld [vmem:[#allocation19] sm:$0xff]  ;;  %v1155_v23 = vld [vmem:[#allocation19 + $0x8] sm:$0xff]  ;;  %v1160_v25 = vld [vmem:[#allocation20 + $0x10] sm:$0xff] }
 0x5e1   :  { %v982_v14 = vmul.f32 %v974_v24, %v2848_v47  ;;  %v1013_v45 = vrot.slane %v1012_v32, 4  ;;  %v1033_v36 = vsel %vm295_vm1, %v983_v6, 0.0  ;;  %v1002_v38 = vadd.f32 %v1001_v31, %v1000_v27  ;;  %v1156_v27 = vld [vmem:[#allocation19 + $0x10] sm:$0xff]  ;;  %v1157_v29 = vld [vmem:[#allocation19 + $0x18] sm:$0xff] }
 0x5e2   :  { %v1021_v41 = vadd.f32 %v1020_v34, %v1019_v30  ;;  %v1034_v48 = vrot.slane %v1033_v36, 4  ;;  %v997_v49 = vadd.f32 %v996_v46, %v995_v62  ;;  %v1010_v59 = vrot.slane %v1009_v39, 1  ;;  %v1161_v62 = vld [vmem:[#allocation20 + $0x18] sm:$0xff] }
 0x5e3   :  { %v1014_v50 = vadd.f32 %v1013_v45, %v1012_v32  ;;  %v1026_v22 = vsel %vm295_vm1, %v982_v14, 0.0  ;;  %v1003_v51 = vrot.slane %v1002_v38, 1  ;;  %v1890_v43 = vpack.c.bf16 %v1159_v20, %v1158_v19  ;;  %v1153_v31 = vld [vmem:[#allocation8] sm:$0xff] }
 0x5e4   :  { %v1022_v40 = vrot.slane %v1021_v41, 2  ;;  %v1027_v53 = vrot.slane %v1026_v22, 4  ;;  %v1035_v58 = vadd.f32 %v1034_v48, %v1033_v36  ;;  %v1053_v4 = vsel %vm1052_vm3, %v997_v49, %v990_v55 }
 0x5e5   :  { %v1015_v56 = vrot.slane %v1014_v50, 2  ;;  %v1004_v47 = vadd.f32 %v1003_v51, %v1002_v38  ;;  %v1011_v9 = vadd.f32 %v1010_v59, %v1009_v39  ;;  %v1896_v26 = vpack.c.bf16 %v1155_v23, %v1154_v21  ;;  %1891 = vmatpush3.bf16.msra.mxu1 %v1890_v43  ;;  %v1353_v59 = vld [vmem:[#allocation25 + $0x8] sm:$0xff] }
 0x5e6   :  { %v1023_v60 = vadd.f32 %v1022_v40, %v1021_v41  ;;  %v1028_v61 = vadd.f32 %v1027_v53, %v1026_v22  ;;  %v1036_v2 = vrot.slane %v1035_v58, 2  ;;  %v1893_v30 = vpack.c.bf16 %v1161_v62, %v1160_v25  ;;  %1892 = vmatprep.subr.bf16.mxu1 %v2447_v0  ;;  %v1682_v41 = vld [vmem:[#allocation22] ss:$0 sm:$0xff] }
 0x5e7   :  { %v1016_v63 = vadd.f32 %v1015_v56, %v1014_v50  ;;  %v1055_v37 = vsel %vm1054_vm4, %v1004_v47, %v1053_v4  ;;  %v1899_v24 = vpack.c.bf16 %v1157_v29, %v1156_v27  ;;  %v1352_v47 = vld [vmem:[#allocation25] sm:$0xff] }
 0x5e8   :  { %v1029_v3 = vrot.slane %v1028_v61, 2  ;;  %v1024_v5 = vrot.slane %v1023_v60, 1  ;;  %v1037_v7 = vadd.f32 %v1036_v2, %v1035_v58  ;;  %v1057_v52 = vsel %vm1056_vm5, %v1011_v9, %v1055_v37  ;;  %v1354_v2 = vld [vmem:[#allocation25 + $0x10] sm:$0xff] }
 0x5e9   :  { %v1017_v28 = vrot.slane %v1016_v63, 1  ;;  %1894 = vmatpush3.bf16.msra.mxu1 %v1893_v30  ;;  %v1541_v30 = vld [vmem:[#allocation28] sm:$0xff] }
 0x5ea   :  { %v1030_v33 = vadd.f32 %v1029_v3, %v1028_v61  ;;  %v1038_v11 = vrot.slane %v1037_v7, 1  ;;  %v1025_v12 = vadd.f32 %v1024_v5, %v1023_v60  ;;  %1901 = vmatprep.subr.bf16.mxu1 %v2447_v0  ;;  %v1348_v60 = vld [vmem:[#allocation23] sm:$0xff]  ;;  %v1902_v61 = vpack.c.bf16 %v1353_v59, %v1352_v47  ;;  %v1355_v3 = vld [vmem:[#allocation25 + $0x18] sm:$0xff] }
 0x5eb   :  { %v1018_v10 = vadd.f32 %v1017_v28, %v1016_v63  ;;  %v1349_v63 = vld [vmem:[#allocation23 + $0x8] sm:$0xff]  ;;  %v1350_v28 = vld [vmem:[#allocation23 + $0x10] sm:$0xff]  ;;  %v1351_v5 = vld [vmem:[#allocation23 + $0x18] sm:$0xff] }
 0x5ec   :  { %v1031_v42 = vrot.slane %v1030_v33, 1  ;;  %v1039_v16 = vadd.f32 %v1038_v11, %v1037_v7  ;;  %1814 = vmatmul.mubr.msk.f32.vlgmr.msra.gmra.mrb[6].mxu1 %vm295_vm1, %v1153_v31  ;;  %v1908_v4 = vpack.c.bf16 %v1349_v63, %v1348_v60  ;;  %v1905_v7 = vpack.c.bf16 %v1355_v3, %v1354_v2 }
 0x5ed   :  { %v1059_v13 = vsel %vm1058_vm6, %v1018_v10, %v1057_v52  ;;  %1835 = vmatprep.mubr.msk.f32.mxu1 %vm2448_vm0, %v2449_v1  ;;  %1903 = vmatpush3.bf16.msra.mxu1 %v1902_v61  ;;  %v1911_v37 = vpack.c.bf16 %v1351_v5, %v1350_v28 }
 0x5ee   :  { %v1032_v15 = vadd.f32 %v1031_v42, %v1030_v33  ;;  %v1061_v17 = vsel %vm1060_vm7, %v1025_v12, %v1059_v13  ;;  %1904 = vmatprep.subr.bf16.mxu1 %v2447_v0  ;;  %v1347_v33 = vld [vmem:[#allocation10] sm:$0xff] }
 0x5f0   :  { %v1063_v57 = vsel %vm1062_vm8, %v1032_v15, %v1061_v17 }
 0x5f1   :  { %v1065_v44 = vsel %vm1064_vm9, %v1039_v16, %v1063_v57  ;;  %1906 = vmatpush3.bf16.msra.mxu1 %v1905_v7 }
 0x5f2   :  { %1803 = vmatmul.mubr.msk.f32.vlgmr.msra.gmra.mrb[8].mxu0 %vm295_vm1, %v1065_v44  ;;  %1913 = vmatprep.subr.bf16.mxu1 %v2447_v0 }
 0x5f3   :  { %1824 = vmatprep.mubr.msk.f32.mxu0 %vm2448_vm0, %v2449_v1  ;;  %1897 = vmatpush3.bf16.msra.mxu0 %v1896_v26 }
 0x5f4   :  { %1898 = vmatprep.subr.bf16.mxu0 %v2447_v0  ;;  %1836 = vmatmul.mubr.msk.f32.vlgmr.msra.gmra.mrb[8].mxu1 %vm295_vm1, %v1347_v33 }
 0x5f5   :  { %1857 = vmatprep.mubr.msk.f32.mxu1 %vm2448_vm0, %v2449_v1 }
 0x5f7   :  { %1900 = vmatpush3.bf16.msra.mxu0 %v1899_v24  ;;  %v1542_v24 = vld [vmem:[#allocation28 + $0x8] sm:$0xff] }
 0x5f8   :  { %1907 = vmatprep.subr.bf16.mxu0 %v2447_v0 }
 0x650   :  { %v1150_v34 = vpop.permute.xlu1 %1149 }
 0x6bf   :  { %v1231_v36 = vpop.f32.mrb[6].mxu1 }
 0x6c0   :  { %v1815_v38 = vpop.f32.mrb[7].mxu1 }
 0x6c5   :  { %v1134_v6 = vpop.f32.mrb[8].mxu0 }
 0x6c6   :  { %1139 = vrot.lane.b32.xlu0 %v1134_v6, %s2450_s9  ;;  %v1804_v46 = vpop.f32.mrb[9].mxu0  ;;  %v1543_v6 = vld [vmem:[#allocation28 + $0x10] sm:$0xff] }
 0x6c7   :  { %v1425_v17 = vpop.f32.mrb[8].mxu1  ;;  %v1914_v46 = vpack.c.bf16 %v1542_v24, %v1541_v30 }
 0x6c8   :  { %v1837_v57 = vpop.f32.mrb[9].mxu1 }
 0x6c9   :  { %1915 = vmatpush3.bf16.msra.mxu1 %v1914_v46 }
 0x6ca   :  { %1916 = vmatprep.subr.bf16.mxu1 %v2447_v0 }
 0x738   :  { %v1140_v32 = vpop.permute.xlu0 %1139 }
 0x739   :  { %v1142_v14 = vadd.f32 %v1140_v32, %v2867_v8 }
 0x73b   :  { %v1152_v35 = vadd.f32 %v1150_v34, %v1142_v14 }
 0x73d   :  { %1236 = vrot.lane.b32.xlu1 %v1152_v35, %s2452_s3 }
 0x7af   :  { %v1237_v45 = vpop.permute.xlu1 %1236 }
 0x7b0   :  { %1825 = vmatmul.mubr.msk.f32.vlgmr.msra.gmra.mrb[10].mxu0 %vm295_vm1, %v1237_v45 }
 0x7b1   :  { %1846 = vmatprep.mubr.msk.f32.mxu0 %vm2448_vm0, %v2449_v1  ;;  %1909 = vmatpush3.bf16.msra.mxu0 %v1908_v4 }
 0x7b2   :  { %1910 = vmatprep.subr.bf16.mxu0 %v2447_v0 }
 0x7b5   :  { %1912 = vmatpush3.bf16.msra.mxu0 %v1911_v37 }
 0x883   :  { %v1306_v39 = vpop.f32.mrb[10].mxu0 }
 0x884   :  { %v1307_v48 = vadd.f32 %v1306_v39, %v1231_v36  ;;  %v1826_v50 = vpop.f32.mrb[11].mxu0 }
 0x885   :  { %v1688_v50 = vld [vmem:[%s3054_s27] ss:$0 sm:$0xff] }
 0x886   :  { %v1317_v22 = vadd.f32 %v1682_v41, %v1307_v48 }
 0x888   :  { %1325 = vrot.lane.b32.xlu0 %v1317_v22, %s2450_s9  ;;  %v1683_v49 = vmul.f32 -1.442695, %v1317_v22 }
 0x88a   :  { %2000 = vpow2.f32 %v1683_v49 }
 0x894   :  { %v2001_v8 = vpop.eup %2000 }
 0x895   :  { %v1321_v51 = vadd.f32 1.0, %v2001_v8 }
 0x897   :  { %2002 = vrcp.f32 %v1321_v51 }
 0x8a1   :  { %v2003_v40 = vpop.eup %2002 }
 0x8a2   :  { %v1335_v11 = vsub.f32 1.0, %v2003_v40 }
 0x8fa   :  { %v1326_v53 = vpop.permute.xlu0 %1325 }
 0x8fb   :  { %v1328_v55 = vmul.f32 %v2003_v40, %v1326_v53 }
 0x8fd   :  { %1330 = vrot.lane.b32.xlu1 %v1328_v55, %s2451_s4 }
 0x901   :  { %1341 = vrot.lane.b32.xlu1 %v1153_v31, %s2450_s9  ;;  %v1544_v31 = vld [vmem:[#allocation28 + $0x18] sm:$0xff] }
 0x902   :  { %v1917_v34 = vpack.c.bf16 %v1544_v31, %v1543_v6 }
 0x904   :  { %1918 = vmatpush3.bf16.msra.mxu1 %v1917_v34 }
 0x96f   :  { %v1331_v56 = vpop.permute.xlu1 %1330 }
 0x970   :  { %v1333_v58 = vadd.f32 %v1331_v56, %v1317_v22 }
 0x972   :  { %2004 = vtanh.f32 %v1333_v58 }
 0x973   :  { %v1342_v10 = vpop.permute.xlu1 %1341 }
 0x974   :  { %v1344_v52 = vmul.f32 %v2003_v40, %v1342_v10 }
 0x97c   :  { %v2005_v9 = vpop.eup %2004 }
 0x97d   :  { %1337 = vrot.lane.b32.xlu0 %v2005_v9, %s2452_s3 }
 0x9ef   :  { %v1338_v42 = vpop.permute.xlu0 %1337 }
 0x9f0   :  { %v1340_v12 = vmul.f32 %v1338_v42, %v1335_v11 }
 0x9f2   :  { %v1345_v13 = vadd.f32 %v1344_v52, %v1340_v12 }
 0x9f4   :  { %v1346_v15 = vadd.f32 %v1345_v13, %v1152_v35 }
 0x9f6   :  { %1430 = vrot.lane.b32.xlu0 %v1346_v15, %s2452_s3 }
 0xa68   :  { %v1431_v16 = vpop.permute.xlu0 %1430 }
 0xa69   :  { %1847 = vmatmul.mubr.msk.f32.vlgmr.msra.gmra.mrb[12].mxu0 %vm295_vm1, %v1431_v16 }
 0xb3c   :  { %v1500_v44 = vpop.f32.mrb[12].mxu0 }
 0xb3d   :  { %v1501_v19 = vadd.f32 %v1500_v44, %v1425_v17  ;;  %v1848_v20 = vpop.f32.mrb[13].mxu0 }
 0xb3f   :  { %v1511_v21 = vadd.f32 %v1686_v18, %v1501_v19 }
 0xb41   :  { %1519 = vrot.lane.b32.xlu1 %v1511_v21, %s2450_s9  ;;  %v1687_v1 = vmul.f32 -1.442695, %v1511_v21 }
 0xb43   :  { %2006 = vpow2.f32 %v1687_v1 }
 0xb4d   :  { %v2007_v43 = vpop.eup %2006 }
 0xb4e   :  { %v1515_v23 = vadd.f32 1.0, %v2007_v43 }
 0xb50   :  { %2008 = vrcp.f32 %v1515_v23 }
 0xb5a   :  { %v2009_v25 = vpop.eup %2008 }
 0xb5b   :  { %v1529_v35 = vsub.f32 1.0, %v2009_v25 }
 0xbb3   :  { %v1520_v62 = vpop.permute.xlu1 %1519 }
 0xbb4   :  { %v1522_v26 = vmul.f32 %v2009_v25, %v1520_v62 }
 0xbb6   :  { %1524 = vrot.lane.b32.xlu0 %v1522_v26, %s2451_s4 }
 0xbba   :  { %1535 = vrot.lane.b32.xlu0 %v1347_v33, %s2450_s9 }
 0xbbe   :  { %1628 = vrot.lane.b32.xlu0 %v1345_v13, %s2450_s9 }
 0xc28   :  { %v1525_v27 = vpop.permute.xlu0 %1524 }
 0xc29   :  { %v1527_v29 = vadd.f32 %v1525_v27, %v1511_v21 }
 0xc2b   :  { %2010 = vtanh.f32 %v1527_v29 }
 0xc2c   :  { %v1536_v14 = vpop.permute.xlu0 %1535 }
 0xc2d   :  { %v1538_v36 = vmul.f32 %v2009_v25, %v1536_v14 }
 0xc30   :  { %v1629_v8 = vpop.permute.xlu0 %1628 }
 0xc35   :  { %v2011_v32 = vpop.eup %2010 }
 0xc36   :  { %1531 = vrot.lane.b32.xlu1 %v2011_v32, %s2452_s3 }
 0xca8   :  { %v1532_v45 = vpop.permute.xlu1 %1531 }
 0xca9   :  { %v1534_v38 = vmul.f32 %v1532_v45, %v1529_v35 }
 0xcab   :  { %v1539_v39 = vadd.f32 %v1538_v36, %v1534_v38 }
 0xcad   :  { %v1540_v41 = vadd.f32 %v1539_v39, %v1346_v15 }
 0xcaf   :  { %1553 = vrot.lane.b32.xlu1 %v1540_v41, %s2452_s3 }
 0xcb3   :  { %1632 = vrot.lane.b32.xlu1 %v1539_v39, %s2451_s4 }
 0xd21   :  { %v1554_v48 = vpop.permute.xlu1 %1553 }
 0xd22   :  { %1858 = vmatmul.mubr.msk.f32.vlgmr.msra.gmra.mrb[10].mxu1 %vm295_vm1, %v1554_v48 }
 0xd25   :  { %v1633_v40 = vpop.permute.xlu1 %1632 }
 0xdf5   :  { %v1623_v0 = vpop.f32.mrb[10].mxu1 }
 0xdf6   :  { %v1624_v22 = vadd.f32 %v1688_v50, %v1623_v0  ;;  %v1859_v49 = vpop.f32.mrb[11].mxu1 }
 0xdf8   :  { %v1635_v51 = vsel %vm295_vm1, %v1624_v22, %v2860_v54 }
 0xdf9   :  { %v1637_v53 = vsel %vm1636_vm10, %v1635_v51, %v1629_v8 }
 0xdfa   :  { %v1639_v55 = vsel %vm1638_vm11, %v1637_v53, %v1633_v40 }
 0xdfb   :  { %1640 = vst [vmem:[#allocation29] sm:$0xff] %v1639_v55 }
 0xdfc   :  { %2397 = shalt.err (!%p2394_p0)
}
 0xdfd   :  { %s3055_s25 = sld [smem:[#allocation48_spill]] }
 0xe03   :  { %s2398_s19 = scalar_lea.hbm %s3055_s25, 128 }
 0xe04   :  { %p2399_p1 = scmp.ne.s32.totalorder %s3055_s25, %s2398_s19  ;;  %p2402_p2 = scmp.lt.u32.totalorder %s2398_s19, %s3055_s25 }
 0xe06   :  { %p2404_p3 = pnand %p2402_p2, %p2399_p1 }
 0xe08   :  { %2407 = shalt.err (!%p2404_p3)
}
 0xe09   :  { %1650 = dma.vmem_to_hbm [thread:$0]  %s1648_s2, 128, %s3055_s25, [#allocation4]  }
 0xe0a   :  { %2426 = dma.done.wait [#allocation4], 128  }
 0xe0b   :  { %2427 = vsyncadd [#allocation4], 4294967168 }
 0xe0c   :  { %1654 = vsyncpa [#allocation3], 1 }
 0xe0d   :  { %1655 = vsyncpa [#allocation6], 1 }
 0xe0e   :  { %1656 = vsyncpa [#allocation9], 1 }
 0xe0f   :  { %1657 = vsyncpa [#allocation12], 1 }
 0xe10   :  { %1658 = vsyncpa [#allocation15], 1 }
 0xe11   :  { %1659 = vsyncpa [#allocation18], 1 }
 0xe12   :  { %1660 = vsyncpa [#allocation21], 1 }
 0xe13   :  { %1661 = vsyncpa [#allocation24], 1 }
 0xe14   :  { %1662 = vsyncpa [#allocation27], 1 }
 0xe15   :  { %1663 = vsyncpa [#allocation4], 1 }

</bundles_post_ra>
